<compile_context>
chip_gen: v7x
topology: tpu7x:2x2x1
jax: 0.10.0
libtpu: 0.0.40
codegen_flags: <defaults>
</compile_context>

<pallas_src>
import functools

import jax
import jax.numpy as jnp
from jax import lax
from jax.experimental import pallas as pl
from jax.experimental.pallas import tpu as pltpu


def mha_kernel(q_ref, k_ref, v_ref,
               wq_ref, bq_ref, wk_ref, bk_ref, wv_ref, bv_ref,
               wo_ref, bo_ref,
               o_ref,
               *, n_heads, d_head):
    """One grid step = `batch_block` batch elements: full MHA forward."""
    Bb, S, E = q_ref.shape
    H, D = n_heads, d_head

    # Lane-dense all-head projections (bf16 MXU operands, f32 accumulation).
    # The softmax scale is already folded into wq/bq on the host.
    xq = q_ref[...].reshape(Bb * S, E).astype(jnp.bfloat16)
    xk = k_ref[...].reshape(Bb * S, E).astype(jnp.bfloat16)
    xv = v_ref[...].reshape(Bb * S, E).astype(jnp.bfloat16)

    q = jnp.dot(xq, wq_ref[...], preferred_element_type=jnp.float32) + bq_ref[...]
    k = jnp.dot(xk, wk_ref[...], preferred_element_type=jnp.float32) + bk_ref[...]
    v = jnp.dot(xv, wv_ref[...], preferred_element_type=jnp.float32) + bv_ref[...]

    for b in range(Bb):                      # small, unrolled
        rows = slice(b * S, (b + 1) * S)
        q_b = q[rows, :]                     # (S, E) f32
        k_b = k[rows, :]
        v_b = v[rows, :]

        acc = bo_ref[...]                    # (1, E) f32; broadcasts to (S, E)
        for h in range(H):                   # small, unrolled
            cols = slice(h * D, (h + 1) * D)
            q_h = q_b[:, cols].astype(jnp.bfloat16)       # (S, D)
            k_h = k_b[:, cols].astype(jnp.bfloat16)       # (S, D)
            v_h = v_b[:, cols].astype(jnp.bfloat16)       # (S, D)

            # scores[i, j] = sum_d q_h[i, d] * k_h[j, d]  (no explicit k.T)
            # NOTE: contraction depth is only d_head=8 -- inherent to this
            # module's config; don't carry this structure to production sizes.
            scores = lax.dot_general(
                q_h, k_h,
                dimension_numbers=(((1,), (1,)), ((), ())),
                preferred_element_type=jnp.float32)       # (S, S) f32

            m = jnp.max(scores, axis=-1, keepdims=True)
            e = jnp.exp(scores - m)                        # f32 on the EUP
            denom = jnp.sum(e, axis=-1, keepdims=True)     # (S, 1)
            probs = e * pl.reciprocal(denom, approx=True)  # (S, S) f32

            ctx_h = jnp.dot(probs.astype(jnp.bfloat16), v_h,
                            preferred_element_type=jnp.float32)       # (S, D)

            # Output projection folded per head: out = sum_h ctx_h @ W_O[h].
            # Keeps accumulation in f32 registers; no narrow lane stores.
            acc = acc + jnp.dot(ctx_h.astype(jnp.bfloat16), wo_ref[h],
                                preferred_element_type=jnp.float32)   # (S, E)

        o_ref[b] = acc.astype(o_ref.dtype)   # single lane-dense (S, E) store


def multi_head_attention(Q, K, V, params, n_heads, *, batch_block=1):
    """params = (wq, bq, wk, bk, wv, bv, wo, bo) with
       wq/wk/wv: (E, H*D), bq/bk/bv: (H*D,), wo: (H*D, E), bo: (E,)."""
    B, S, E = Q.shape
    assert E % n_heads == 0, "embed_dim must be divisible by n_heads"
    assert B % batch_block == 0, "batch must be divisible by batch_block"
    d_head = E // n_heads
    scale = 1.0 / (d_head ** 0.5)

    wq, bq, wk, bk, wv, bv, wo, bo = params

    # Host-side prep (free): fold the attention scale into the Q projection,
    # cast MXU weight operands to bf16 (halves resident VMEM + weight DMA),
    # keep biases in f32 (they are added to f32 accumulators), and reshape
    # W_O to (H, D, E) for cheap per-head leading-index reads.
    wq_b = (wq * scale).astype(jnp.bfloat16)
    wk_b = wk.astype(jnp.bfloat16)
    wv_b = wv.astype(jnp.bfloat16)
    wo_b = wo.reshape(n_heads, d_head, E).astype(jnp.bfloat16)
    bq_2 = (bq * scale).reshape(1, E).astype(jnp.float32)
    bk_2 = bk.reshape(1, E).astype(jnp.float32)
    bv_2 = bv.reshape(1, E).astype(jnp.float32)
    bo_2 = bo.reshape(1, E).astype(jnp.float32)

    kernel = functools.partial(mha_kernel, n_heads=n_heads, d_head=d_head)
    grid = (B // batch_block,)
    seq_spec = pl.BlockSpec((batch_block, S, E), lambda i: (i, 0, 0))
    out_spec = pl.BlockSpec((batch_block, S, E), lambda i: (i, 0, 0))

    def resident(shape, single_buffer):
        index_map = {2: (lambda i: (0, 0)), 3: (lambda i: (0, 0, 0))}[len(shape)]
        if single_buffer:
            # Constant index_map keeps the block resident; Buffered(1) drops
            # the second (useless) pipeline buffer for it.
            return pl.BlockSpec(shape, index_map, pipeline_mode=pl.Buffered(1))
        return pl.BlockSpec(shape, index_map)

    def run(single_buffer_weights):
        in_specs = [
            seq_spec, seq_spec, seq_spec,
            resident((E, E), single_buffer_weights),
            resident((1, E), single_buffer_weights),
            resident((E, E), single_buffer_weights),
            resident((1, E), single_buffer_weights),
            resident((E, E), single_buffer_weights),
            resident((1, E), single_buffer_weights),
            resident((n_heads, d_head, E), single_buffer_weights),
            resident((1, E), single_buffer_weights),
        ]
        fn = pl.pallas_call(
            kernel,
            out_shape=jax.ShapeDtypeStruct((B, S, E), jnp.float32),
            grid_spec=pltpu.PrefetchScalarGridSpec(
                num_scalar_prefetch=0,
                grid=grid,
                in_specs=in_specs,
                out_specs=out_spec,
            ),
            compiler_params=pltpu.CompilerParams(
                dimension_semantics=("parallel",),
                # Explicit budget (well above the tiny working set here; fits
                # every generation: <= 64 MiB physical on v7x).
                vmem_limit_bytes=32 * 1024 * 1024),
        )
        out = fn(Q, K, V, wq_b, bq_2, wk_b, bk_2, wv_b, bv_2, wo_b, bo_2)
        return jax.block_until_ready(out)

    try:
        return run(True)
    except Exception:
        # pipeline_mode=pl.Buffered(1) not supported by this Pallas build;
        # fall back to default double-buffered resident weights.
        return run(False)


def reference_mha(Q, K, V, params, n_heads):
    """Pure-JAX reference mirroring the PyTorch forward (eval mode, no mask)."""
    wq, bq, wk, bk, wv, bv, wo, bo = params
    B, S, E = Q.shape
    d = E // n_heads

    def proj(X, W, b):
        y = X @ W + b
        return y.reshape(B, S, n_heads, d).transpose(0, 2, 1, 3)   # (B, H, S, D)

    q = proj(Q, wq, bq)
    k = proj(K, wk, bk)
    v = proj(V, wv, bv)
    scores = jnp.einsum('bhqd,bhkd->bhqk', q, k) * (1.0 / d ** 0.5)
    p = jax.nn.softmax(scores, axis=-1)
    ctx = jnp.einsum('bhqk,bhkd->bhqd', p, v)
    ctx = ctx.transpose(0, 2, 1, 3).reshape(B, S, n_heads * d)
    return ctx @ wo + bo


if __name__ == "__main__":
    batch, seq, embed, n_heads = 2, 8, 32, 4

    key = jax.random.PRNGKey(0)
    keys = jax.random.split(key, 12)

    Q = jax.random.normal(keys[0], (batch, seq, embed), jnp.float32)
    K = jax.random.normal(keys[1], (batch, seq, embed), jnp.float32)
    V = jax.random.normal(keys[2], (batch, seq, embed), jnp.float32)

    hd = embed  # n_heads * d_head == embed
    wq = 0.1 * jax.random.normal(keys[3], (embed, hd), jnp.float32)
    bq = 0.1 * jax.random.normal(keys[4], (hd,), jnp.float32)
    wk = 0.1 * jax.random.normal(keys[5], (embed, hd), jnp.float32)
    bk = 0.1 * jax.random.normal(keys[6], (hd,), jnp.float32)
    wv = 0.1 * jax.random.normal(keys[7], (embed, hd), jnp.float32)
    bv = 0.1 * jax.random.normal(keys[8], (hd,), jnp.float32)
    wo = 0.1 * jax.random.normal(keys[9], (hd, embed), jnp.float32)
    bo = 0.1 * jax.random.normal(keys[10], (embed,), jnp.float32)

    params = (wq, bq, wk, bk, wv, bv, wo, bo)

    # batch_block=1 -> grid=(2,), one step per TensorCore on v7x megacore.
    out = multi_head_attention(Q, K, V, params, n_heads, batch_block=1)
    out = jax.block_until_ready(out)

    ref = reference_mha(Q, K, V, params, n_heads)
    assert out.shape == (batch, seq, embed)
    # bf16 MXU operands + approx reciprocal -> loosened tolerance (f32 ref).
    assert jnp.allclose(out, ref, atol=2e-2, rtol=2e-2), "mismatch vs reference"

    print("KERNEL_OK")
</pallas_src>

<mosaic_0001>
module attributes {stable_mosaic.version = 11 : i64} {
  func.func @mha_kernel(%arg0: i32, %arg1: memref<1x8x32xf32, #tpu.memory_space<vmem>>, %arg2: memref<1x8x32xf32, #tpu.memory_space<vmem>>, %arg3: memref<1x8x32xf32, #tpu.memory_space<vmem>>, %arg4: memref<32x32xbf16, #tpu.memory_space<vmem>>, %arg5: memref<1x32xf32, #tpu.memory_space<vmem>>, %arg6: memref<32x32xbf16, #tpu.memory_space<vmem>>, %arg7: memref<1x32xf32, #tpu.memory_space<vmem>>, %arg8: memref<32x32xbf16, #tpu.memory_space<vmem>>, %arg9: memref<1x32xf32, #tpu.memory_space<vmem>>, %arg10: memref<4x8x32xbf16, #tpu.memory_space<vmem>>, %arg11: memref<1x32xf32, #tpu.memory_space<vmem>>, %arg12: memref<1x8x32xf32, #tpu.memory_space<vmem>>) attributes {dimension_semantics = [#tpu.dimension_semantics<parallel>], iteration_bounds = array<i64: 2>, scalar_prefetch = 0 : i64, scratch_operands = 0 : i64, tpu.core_type = #tpu.core_type<tc>, window_params = [{transform_indices = @transform_0, window_bounds = array<i64: 1, 8, 32>}, {transform_indices = @transform_1, window_bounds = array<i64: 1, 8, 32>}, {transform_indices = @transform_2, window_bounds = array<i64: 1, 8, 32>}, {pipeline_mode = #tpu.pipeline_mode<synchronous>, transform_indices = @transform_3, window_bounds = array<i64: 32, 32>}, {pipeline_mode = #tpu.pipeline_mode<synchronous>, transform_indices = @transform_4, window_bounds = array<i64: 1, 32>}, {pipeline_mode = #tpu.pipeline_mode<synchronous>, transform_indices = @transform_5, window_bounds = array<i64: 32, 32>}, {pipeline_mode = #tpu.pipeline_mode<synchronous>, transform_indices = @transform_6, window_bounds = array<i64: 1, 32>}, {pipeline_mode = #tpu.pipeline_mode<synchronous>, transform_indices = @transform_7, window_bounds = array<i64: 32, 32>}, {pipeline_mode = #tpu.pipeline_mode<synchronous>, transform_indices = @transform_8, window_bounds = array<i64: 1, 32>}, {pipeline_mode = #tpu.pipeline_mode<synchronous>, transform_indices = @transform_9, window_bounds = array<i64: 4, 8, 32>}, {pipeline_mode = #tpu.pipeline_mode<synchronous>, transform_indices = @transform_10, window_bounds = array<i64: 1, 32>}, {transform_indices = @transform_11, window_bounds = array<i64: 1, 8, 32>}]} {
    %c0 = arith.constant 0 : index
    %c0_0 = arith.constant 0 : index
    %c0_1 = arith.constant 0 : index
    %0 = vector.load %arg1[%c0, %c0_0, %c0_1] : memref<1x8x32xf32, #tpu.memory_space<vmem>>, vector<1x8x32xf32>
    %1 = vector.shape_cast %0 : vector<1x8x32xf32> to vector<8x32xf32>
    %2 = arith.truncf %1 : vector<8x32xf32> to vector<8x32xbf16>
    %c0_2 = arith.constant 0 : index
    %c0_3 = arith.constant 0 : index
    %c0_4 = arith.constant 0 : index
    %3 = vector.load %arg2[%c0_2, %c0_3, %c0_4] : memref<1x8x32xf32, #tpu.memory_space<vmem>>, vector<1x8x32xf32>
    %4 = vector.shape_cast %3 : vector<1x8x32xf32> to vector<8x32xf32>
    %5 = arith.truncf %4 : vector<8x32xf32> to vector<8x32xbf16>
    %c0_5 = arith.constant 0 : index
    %c0_6 = arith.constant 0 : index
    %c0_7 = arith.constant 0 : index
    %6 = vector.load %arg3[%c0_5, %c0_6, %c0_7] : memref<1x8x32xf32, #tpu.memory_space<vmem>>, vector<1x8x32xf32>
    %7 = vector.shape_cast %6 : vector<1x8x32xf32> to vector<8x32xf32>
    %8 = arith.truncf %7 : vector<8x32xf32> to vector<8x32xbf16>
    %c0_8 = arith.constant 0 : index
    %c0_9 = arith.constant 0 : index
    %9 = vector.load %arg4[%c0_8, %c0_9] : memref<32x32xbf16, #tpu.memory_space<vmem>>, vector<32x32xbf16>
    %cst = arith.constant dense<0.000000e+00> : vector<8x32xf32>
    %10 = tpu.matmul %2, %9, %cst {dimension_numbers = #tpu.dot_dimension_numbers<[1], [0], [0], [1], [0, 0, 1, 1], [], []>} : vector<8x32xbf16>, vector<32x32xbf16>, vector<8x32xf32> -> vector<8x32xf32>
    %c0_10 = arith.constant 0 : index
    %c0_11 = arith.constant 0 : index
    %11 = vector.load %arg5[%c0_10, %c0_11] : memref<1x32xf32, #tpu.memory_space<vmem>>, vector<1x32xf32>
    %12 = vector.broadcast %11 : vector<1x32xf32> to vector<8x32xf32>
    %13 = arith.addf %10, %12 : vector<8x32xf32>
    %c0_12 = arith.constant 0 : index
    %c0_13 = arith.constant 0 : index
    %14 = vector.load %arg6[%c0_12, %c0_13] : memref<32x32xbf16, #tpu.memory_space<vmem>>, vector<32x32xbf16>
    %cst_14 = arith.constant dense<0.000000e+00> : vector<8x32xf32>
    %15 = tpu.matmul %5, %14, %cst_14 {dimension_numbers = #tpu.dot_dimension_numbers<[1], [0], [0], [1], [0, 0, 1, 1], [], []>} : vector<8x32xbf16>, vector<32x32xbf16>, vector<8x32xf32> -> vector<8x32xf32>
    %c0_15 = arith.constant 0 : index
    %c0_16 = arith.constant 0 : index
    %16 = vector.load %arg7[%c0_15, %c0_16] : memref<1x32xf32, #tpu.memory_space<vmem>>, vector<1x32xf32>
    %17 = vector.broadcast %16 : vector<1x32xf32> to vector<8x32xf32>
    %18 = arith.addf %15, %17 : vector<8x32xf32>
    %c0_17 = arith.constant 0 : index
    %c0_18 = arith.constant 0 : index
    %19 = vector.load %arg8[%c0_17, %c0_18] : memref<32x32xbf16, #tpu.memory_space<vmem>>, vector<32x32xbf16>
    %cst_19 = arith.constant dense<0.000000e+00> : vector<8x32xf32>
    %20 = tpu.matmul %8, %19, %cst_19 {dimension_numbers = #tpu.dot_dimension_numbers<[1], [0], [0], [1], [0, 0, 1, 1], [], []>} : vector<8x32xbf16>, vector<32x32xbf16>, vector<8x32xf32> -> vector<8x32xf32>
    %c0_20 = arith.constant 0 : index
    %c0_21 = arith.constant 0 : index
    %21 = vector.load %arg9[%c0_20, %c0_21] : memref<1x32xf32, #tpu.memory_space<vmem>>, vector<1x32xf32>
    %22 = vector.broadcast %21 : vector<1x32xf32> to vector<8x32xf32>
    %23 = arith.addf %20, %22 : vector<8x32xf32>
    %c0_22 = arith.constant 0 : index
    %c0_23 = arith.constant 0 : index
    %24 = vector.load %arg11[%c0_22, %c0_23] : memref<1x32xf32, #tpu.memory_space<vmem>>, vector<1x32xf32>
    %25 = vector.extract_strided_slice %13 {offsets = [0, 0], sizes = [8, 8], strides = [1, 1]} : vector<8x32xf32> to vector<8x8xf32>
    %26 = arith.truncf %25 : vector<8x8xf32> to vector<8x8xbf16>
    %27 = vector.extract_strided_slice %18 {offsets = [0, 0], sizes = [8, 8], strides = [1, 1]} : vector<8x32xf32> to vector<8x8xf32>
    %28 = arith.truncf %27 : vector<8x8xf32> to vector<8x8xbf16>
    %29 = vector.extract_strided_slice %23 {offsets = [0, 0], sizes = [8, 8], strides = [1, 1]} : vector<8x32xf32> to vector<8x8xf32>
    %30 = arith.truncf %29 : vector<8x8xf32> to vector<8x8xbf16>
    %cst_24 = arith.constant dense<0.000000e+00> : vector<8x8xf32>
    %31 = tpu.matmul %26, %28, %cst_24 {dimension_numbers = #tpu.dot_dimension_numbers<[1], [1], [0], [0], [0, 0, 1, 0], [], []>} : vector<8x8xbf16>, vector<8x8xbf16>, vector<8x8xf32> -> vector<8x8xf32>
    %cst_25 = arith.constant dense<0xFF800000> : vector<8xf32>
    %32 = vector.multi_reduction <maximumf>, %31, %cst_25 [1] : vector<8x8xf32> to vector<8xf32>
    %33 = vector.shape_cast %32 : vector<8xf32> to vector<8x1xf32>
    %34 = vector.broadcast %33 : vector<8x1xf32> to vector<8x8xf32>
    %35 = arith.subf %31, %34 : vector<8x8xf32>
    %36 = math.exp %35 : vector<8x8xf32>
    %cst_26 = arith.constant dense<0.000000e+00> : vector<8xf32>
    %37 = vector.multi_reduction <add>, %36, %cst_26 [1] : vector<8x8xf32> to vector<8xf32>
    %38 = vector.shape_cast %37 : vector<8xf32> to vector<8x1xf32>
    %39 = tpu.reciprocal %38 {approx = true} : vector<8x1xf32> -> vector<8x1xf32>
    %40 = vector.broadcast %39 : vector<8x1xf32> to vector<8x8xf32>
    %41 = arith.mulf %36, %40 : vector<8x8xf32>
    %42 = arith.truncf %41 : vector<8x8xf32> to vector<8x8xbf16>
    %cst_27 = arith.constant dense<0.000000e+00> : vector<8x8xf32>
    %43 = tpu.matmul %42, %30, %cst_27 {dimension_numbers = #tpu.dot_dimension_numbers<[1], [0], [0], [1], [0, 0, 1, 1], [], []>} : vector<8x8xbf16>, vector<8x8xbf16>, vector<8x8xf32> -> vector<8x8xf32>
    %44 = arith.truncf %43 : vector<8x8xf32> to vector<8x8xbf16>
    %c0_28 = arith.constant 0 : index
    %c0_29 = arith.constant 0 : index
    %c0_30 = arith.constant 0 : index
    %45 = vector.load %arg10[%c0_28, %c0_29, %c0_30] : memref<4x8x32xbf16, #tpu.memory_space<vmem>>, vector<1x8x32xbf16>
    %46 = vector.shape_cast %45 : vector<1x8x32xbf16> to vector<8x32xbf16>
    %cst_31 = arith.constant dense<0.000000e+00> : vector<8x32xf32>
    %47 = tpu.matmul %44, %46, %cst_31 {dimension_numbers = #tpu.dot_dimension_numbers<[1], [0], [0], [1], [0, 0, 1, 1], [], []>} : vector<8x8xbf16>, vector<8x32xbf16>, vector<8x32xf32> -> vector<8x32xf32>
    %48 = vector.broadcast %24 : vector<1x32xf32> to vector<8x32xf32>
    %49 = arith.addf %48, %47 : vector<8x32xf32>
    %50 = vector.extract_strided_slice %13 {offsets = [0, 8], sizes = [8, 8], strides = [1, 1]} : vector<8x32xf32> to vector<8x8xf32>
    %51 = arith.truncf %50 : vector<8x8xf32> to vector<8x8xbf16>
    %52 = vector.extract_strided_slice %18 {offsets = [0, 8], sizes = [8, 8], strides = [1, 1]} : vector<8x32xf32> to vector<8x8xf32>
    %53 = arith.truncf %52 : vector<8x8xf32> to vector<8x8xbf16>
    %54 = vector.extract_strided_slice %23 {offsets = [0, 8], sizes = [8, 8], strides = [1, 1]} : vector<8x32xf32> to vector<8x8xf32>
    %55 = arith.truncf %54 : vector<8x8xf32> to vector<8x8xbf16>
    %cst_32 = arith.constant dense<0.000000e+00> : vector<8x8xf32>
    %56 = tpu.matmul %51, %53, %cst_32 {dimension_numbers = #tpu.dot_dimension_numbers<[1], [1], [0], [0], [0, 0, 1, 0], [], []>} : vector<8x8xbf16>, vector<8x8xbf16>, vector<8x8xf32> -> vector<8x8xf32>
    %cst_33 = arith.constant dense<0xFF800000> : vector<8xf32>
    %57 = vector.multi_reduction <maximumf>, %56, %cst_33 [1] : vector<8x8xf32> to vector<8xf32>
    %58 = vector.shape_cast %57 : vector<8xf32> to vector<8x1xf32>
    %59 = vector.broadcast %58 : vector<8x1xf32> to vector<8x8xf32>
    %60 = arith.subf %56, %59 : vector<8x8xf32>
    %61 = math.exp %60 : vector<8x8xf32>
    %cst_34 = arith.constant dense<0.000000e+00> : vector<8xf32>
    %62 = vector.multi_reduction <add>, %61, %cst_34 [1] : vector<8x8xf32> to vector<8xf32>
    %63 = vector.shape_cast %62 : vector<8xf32> to vector<8x1xf32>
    %64 = tpu.reciprocal %63 {approx = true} : vector<8x1xf32> -> vector<8x1xf32>
    %65 = vector.broadcast %64 : vector<8x1xf32> to vector<8x8xf32>
    %66 = arith.mulf %61, %65 : vector<8x8xf32>
    %67 = arith.truncf %66 : vector<8x8xf32> to vector<8x8xbf16>
    %cst_35 = arith.constant dense<0.000000e+00> : vector<8x8xf32>
    %68 = tpu.matmul %67, %55, %cst_35 {dimension_numbers = #tpu.dot_dimension_numbers<[1], [0], [0], [1], [0, 0, 1, 1], [], []>} : vector<8x8xbf16>, vector<8x8xbf16>, vector<8x8xf32> -> vector<8x8xf32>
    %69 = arith.truncf %68 : vector<8x8xf32> to vector<8x8xbf16>
    %c1 = arith.constant 1 : index
    %c0_36 = arith.constant 0 : index
    %c0_37 = arith.constant 0 : index
    %70 = vector.load %arg10[%c1, %c0_36, %c0_37] : memref<4x8x32xbf16, #tpu.memory_space<vmem>>, vector<1x8x32xbf16>
    %71 = vector.shape_cast %70 : vector<1x8x32xbf16> to vector<8x32xbf16>
    %cst_38 = arith.constant dense<0.000000e+00> : vector<8x32xf32>
    %72 = tpu.matmul %69, %71, %cst_38 {dimension_numbers = #tpu.dot_dimension_numbers<[1], [0], [0], [1], [0, 0, 1, 1], [], []>} : vector<8x8xbf16>, vector<8x32xbf16>, vector<8x32xf32> -> vector<8x32xf32>
    %73 = arith.addf %49, %72 : vector<8x32xf32>
    %74 = vector.extract_strided_slice %13 {offsets = [0, 16], sizes = [8, 8], strides = [1, 1]} : vector<8x32xf32> to vector<8x8xf32>
    %75 = arith.truncf %74 : vector<8x8xf32> to vector<8x8xbf16>
    %76 = vector.extract_strided_slice %18 {offsets = [0, 16], sizes = [8, 8], strides = [1, 1]} : vector<8x32xf32> to vector<8x8xf32>
    %77 = arith.truncf %76 : vector<8x8xf32> to vector<8x8xbf16>
    %78 = vector.extract_strided_slice %23 {offsets = [0, 16], sizes = [8, 8], strides = [1, 1]} : vector<8x32xf32> to vector<8x8xf32>
    %79 = arith.truncf %78 : vector<8x8xf32> to vector<8x8xbf16>
    %cst_39 = arith.constant dense<0.000000e+00> : vector<8x8xf32>
    %80 = tpu.matmul %75, %77, %cst_39 {dimension_numbers = #tpu.dot_dimension_numbers<[1], [1], [0], [0], [0, 0, 1, 0], [], []>} : vector<8x8xbf16>, vector<8x8xbf16>, vector<8x8xf32> -> vector<8x8xf32>
    %cst_40 = arith.constant dense<0xFF800000> : vector<8xf32>
    %81 = vector.multi_reduction <maximumf>, %80, %cst_40 [1] : vector<8x8xf32> to vector<8xf32>
    %82 = vector.shape_cast %81 : vector<8xf32> to vector<8x1xf32>
    %83 = vector.broadcast %82 : vector<8x1xf32> to vector<8x8xf32>
    %84 = arith.subf %80, %83 : vector<8x8xf32>
    %85 = math.exp %84 : vector<8x8xf32>
    %cst_41 = arith.constant dense<0.000000e+00> : vector<8xf32>
    %86 = vector.multi_reduction <add>, %85, %cst_41 [1] : vector<8x8xf32> to vector<8xf32>
    %87 = vector.shape_cast %86 : vector<8xf32> to vector<8x1xf32>
    %88 = tpu.reciprocal %87 {approx = true} : vector<8x1xf32> -> vector<8x1xf32>
    %89 = vector.broadcast %88 : vector<8x1xf32> to vector<8x8xf32>
    %90 = arith.mulf %85, %89 : vector<8x8xf32>
    %91 = arith.truncf %90 : vector<8x8xf32> to vector<8x8xbf16>
    %cst_42 = arith.constant dense<0.000000e+00> : vector<8x8xf32>
    %92 = tpu.matmul %91, %79, %cst_42 {dimension_numbers = #tpu.dot_dimension_numbers<[1], [0], [0], [1], [0, 0, 1, 1], [], []>} : vector<8x8xbf16>, vector<8x8xbf16>, vector<8x8xf32> -> vector<8x8xf32>
    %93 = arith.truncf %92 : vector<8x8xf32> to vector<8x8xbf16>
    %c2 = arith.constant 2 : index
    %c0_43 = arith.constant 0 : index
    %c0_44 = arith.constant 0 : index
    %94 = vector.load %arg10[%c2, %c0_43, %c0_44] : memref<4x8x32xbf16, #tpu.memory_space<vmem>>, vector<1x8x32xbf16>
    %95 = vector.shape_cast %94 : vector<1x8x32xbf16> to vector<8x32xbf16>
    %cst_45 = arith.constant dense<0.000000e+00> : vector<8x32xf32>
    %96 = tpu.matmul %93, %95, %cst_45 {dimension_numbers = #tpu.dot_dimension_numbers<[1], [0], [0], [1], [0, 0, 1, 1], [], []>} : vector<8x8xbf16>, vector<8x32xbf16>, vector<8x32xf32> -> vector<8x32xf32>
    %97 = arith.addf %73, %96 : vector<8x32xf32>
    %98 = vector.extract_strided_slice %13 {offsets = [0, 24], sizes = [8, 8], strides = [1, 1]} : vector<8x32xf32> to vector<8x8xf32>
    %99 = arith.truncf %98 : vector<8x8xf32> to vector<8x8xbf16>
    %100 = vector.extract_strided_slice %18 {offsets = [0, 24], sizes = [8, 8], strides = [1, 1]} : vector<8x32xf32> to vector<8x8xf32>
    %101 = arith.truncf %100 : vector<8x8xf32> to vector<8x8xbf16>
    %102 = vector.extract_strided_slice %23 {offsets = [0, 24], sizes = [8, 8], strides = [1, 1]} : vector<8x32xf32> to vector<8x8xf32>
    %103 = arith.truncf %102 : vector<8x8xf32> to vector<8x8xbf16>
    %cst_46 = arith.constant dense<0.000000e+00> : vector<8x8xf32>
    %104 = tpu.matmul %99, %101, %cst_46 {dimension_numbers = #tpu.dot_dimension_numbers<[1], [1], [0], [0], [0, 0, 1, 0], [], []>} : vector<8x8xbf16>, vector<8x8xbf16>, vector<8x8xf32> -> vector<8x8xf32>
    %cst_47 = arith.constant dense<0xFF800000> : vector<8xf32>
    %105 = vector.multi_reduction <maximumf>, %104, %cst_47 [1] : vector<8x8xf32> to vector<8xf32>
    %106 = vector.shape_cast %105 : vector<8xf32> to vector<8x1xf32>
    %107 = vector.broadcast %106 : vector<8x1xf32> to vector<8x8xf32>
    %108 = arith.subf %104, %107 : vector<8x8xf32>
    %109 = math.exp %108 : vector<8x8xf32>
    %cst_48 = arith.constant dense<0.000000e+00> : vector<8xf32>
    %110 = vector.multi_reduction <add>, %109, %cst_48 [1] : vector<8x8xf32> to vector<8xf32>
    %111 = vector.shape_cast %110 : vector<8xf32> to vector<8x1xf32>
    %112 = tpu.reciprocal %111 {approx = true} : vector<8x1xf32> -> vector<8x1xf32>
    %113 = vector.broadcast %112 : vector<8x1xf32> to vector<8x8xf32>
    %114 = arith.mulf %109, %113 : vector<8x8xf32>
    %115 = arith.truncf %114 : vector<8x8xf32> to vector<8x8xbf16>
    %cst_49 = arith.constant dense<0.000000e+00> : vector<8x8xf32>
    %116 = tpu.matmul %115, %103, %cst_49 {dimension_numbers = #tpu.dot_dimension_numbers<[1], [0], [0], [1], [0, 0, 1, 1], [], []>} : vector<8x8xbf16>, vector<8x8xbf16>, vector<8x8xf32> -> vector<8x8xf32>
    %117 = arith.truncf %116 : vector<8x8xf32> to vector<8x8xbf16>
    %c3 = arith.constant 3 : index
    %c0_50 = arith.constant 0 : index
    %c0_51 = arith.constant 0 : index
    %118 = vector.load %arg10[%c3, %c0_50, %c0_51] : memref<4x8x32xbf16, #tpu.memory_space<vmem>>, vector<1x8x32xbf16>
    %119 = vector.shape_cast %118 : vector<1x8x32xbf16> to vector<8x32xbf16>
    %cst_52 = arith.constant dense<0.000000e+00> : vector<8x32xf32>
    %120 = tpu.matmul %117, %119, %cst_52 {dimension_numbers = #tpu.dot_dimension_numbers<[1], [0], [0], [1], [0, 0, 1, 1], [], []>} : vector<8x8xbf16>, vector<8x32xbf16>, vector<8x32xf32> -> vector<8x32xf32>
    %121 = arith.addf %97, %120 : vector<8x32xf32>
    %c0_53 = arith.constant 0 : index
    %c0_54 = arith.constant 0 : index
    %c0_55 = arith.constant 0 : index
    %122 = vector.load %arg12[%c0_53, %c0_54, %c0_55] : memref<1x8x32xf32, #tpu.memory_space<vmem>>, vector<1x8x32xf32>
    %123 = vector.shape_cast %122 : vector<1x8x32xf32> to vector<8x32xf32>
    %124 = vector.shape_cast %121 : vector<8x32xf32> to vector<1x8x32xf32>
    tpu.vector_store %arg12[%c0_53, %c0_54, %c0_55], %124 {strides = array<i32>} : memref<1x8x32xf32, #tpu.memory_space<vmem>>, vector<1x8x32xf32>,
    return
  }
  func.func @transform_0(%arg0: i32) -> (i32, i32, i32) {
    %c0_i32 = arith.constant 0 : i32
    %c0_i32_0 = arith.constant 0 : i32
    %c0_i32_1 = arith.constant 0 : i32
    return %arg0, %c0_i32, %c0_i32_0 : i32, i32, i32
  }
  func.func @transform_1(%arg0: i32) -> (i32, i32, i32) {
    %c0_i32 = arith.constant 0 : i32
    %c0_i32_0 = arith.constant 0 : i32
    %c0_i32_1 = arith.constant 0 : i32
    return %arg0, %c0_i32, %c0_i32_0 : i32, i32, i32
  }
  func.func @transform_2(%arg0: i32) -> (i32, i32, i32) {
    %c0_i32 = arith.constant 0 : i32
    %c0_i32_0 = arith.constant 0 : i32
    %c0_i32_1 = arith.constant 0 : i32
    return %arg0, %c0_i32, %c0_i32_0 : i32, i32, i32
  }
  func.func @transform_3(%arg0: i32) -> (i32, i32) {
    %c0_i32 = arith.constant 0 : i32
    %c0_i32_0 = arith.constant 0 : i32
    %c0_i32_1 = arith.constant 0 : i32
    return %c0_i32, %c0_i32_0 : i32, i32
  }
  func.func @transform_4(%arg0: i32) -> (i32, i32) {
    %c0_i32 = arith.constant 0 : i32
    %c0_i32_0 = arith.constant 0 : i32
    %c0_i32_1 = arith.constant 0 : i32
    return %c0_i32, %c0_i32_0 : i32, i32
  }
  func.func @transform_5(%arg0: i32) -> (i32, i32) {
    %c0_i32 = arith.constant 0 : i32
    %c0_i32_0 = arith.constant 0 : i32
    %c0_i32_1 = arith.constant 0 : i32
    return %c0_i32, %c0_i32_0 : i32, i32
  }
  func.func @transform_6(%arg0: i32) -> (i32, i32) {
    %c0_i32 = arith.constant 0 : i32
    %c0_i32_0 = arith.constant 0 : i32
    %c0_i32_1 = arith.constant 0 : i32
    return %c0_i32, %c0_i32_0 : i32, i32
  }
  func.func @transform_7(%arg0: i32) -> (i32, i32) {
    %c0_i32 = arith.constant 0 : i32
    %c0_i32_0 = arith.constant 0 : i32
    %c0_i32_1 = arith.constant 0 : i32
    return %c0_i32, %c0_i32_0 : i32, i32
  }
  func.func @transform_8(%arg0: i32) -> (i32, i32) {
    %c0_i32 = arith.constant 0 : i32
    %c0_i32_0 = arith.constant 0 : i32
    %c0_i32_1 = arith.constant 0 : i32
    return %c0_i32, %c0_i32_0 : i32, i32
  }
  func.func @transform_9(%arg0: i32) -> (i32, i32, i32) {
    %c0_i32 = arith.constant 0 : i32
    %c0_i32_0 = arith.constant 0 : i32
    %c0_i32_1 = arith.constant 0 : i32
    %c0_i32_2 = arith.constant 0 : i32
    return %c0_i32, %c0_i32_0, %c0_i32_1 : i32, i32, i32
  }
  func.func @transform_10(%arg0: i32) -> (i32, i32) {
    %c0_i32 = arith.constant 0 : i32
    %c0_i32_0 = arith.constant 0 : i32
    %c0_i32_1 = arith.constant 0 : i32
    return %c0_i32, %c0_i32_0 : i32, i32
  }
  func.func @transform_11(%arg0: i32) -> (i32, i32, i32) {
    %c0_i32 = arith.constant 0 : i32
    %c0_i32_0 = arith.constant 0 : i32
    %c0_i32_1 = arith.constant 0 : i32
    return %arg0, %c0_i32, %c0_i32_0 : i32, i32, i32
  }
}

module attributes {stable_mosaic.version = 11 : i64} {
  func.func @mha_kernel(%arg0: i32, %arg1: memref<1x8x32xf32, #tpu.memory_space<vmem>>, %arg2: memref<1x8x32xf32, #tpu.memory_space<vmem>>, %arg3: memref<1x8x32xf32, #tpu.memory_space<vmem>>, %arg4: memref<32x32xbf16, #tpu.memory_space<vmem>>, %arg5: memref<1x32xf32, #tpu.memory_space<vmem>>, %arg6: memref<32x32xbf16, #tpu.memory_space<vmem>>, %arg7: memref<1x32xf32, #tpu.memory_space<vmem>>, %arg8: memref<32x32xbf16, #tpu.memory_space<vmem>>, %arg9: memref<1x32xf32, #tpu.memory_space<vmem>>, %arg10: memref<4x8x32xbf16, #tpu.memory_space<vmem>>, %arg11: memref<1x32xf32, #tpu.memory_space<vmem>>, %arg12: memref<1x8x32xf32, #tpu.memory_space<vmem>>) attributes {dimension_semantics = [#tpu.dimension_semantics<parallel>], iteration_bounds = array<i64: 2>, scalar_prefetch = 0 : i64, scratch_operands = 0 : i64, tpu.core_type = #tpu.core_type<tc>, window_params = [{transform_indices = @transform_0, window_bounds = array<i64: 1, 8, 32>}, {transform_indices = @transform_1, window_bounds = array<i64: 1, 8, 32>}, {transform_indices = @transform_2, window_bounds = array<i64: 1, 8, 32>}, {pipeline_mode = #tpu.pipeline_mode<synchronous>, transform_indices = @transform_3, window_bounds = array<i64: 32, 32>}, {pipeline_mode = #tpu.pipeline_mode<synchronous>, transform_indices = @transform_4, window_bounds = array<i64: 1, 32>}, {pipeline_mode = #tpu.pipeline_mode<synchronous>, transform_indices = @transform_5, window_bounds = array<i64: 32, 32>}, {pipeline_mode = #tpu.pipeline_mode<synchronous>, transform_indices = @transform_6, window_bounds = array<i64: 1, 32>}, {pipeline_mode = #tpu.pipeline_mode<synchronous>, transform_indices = @transform_7, window_bounds = array<i64: 32, 32>}, {pipeline_mode = #tpu.pipeline_mode<synchronous>, transform_indices = @transform_8, window_bounds = array<i64: 1, 32>}, {pipeline_mode = #tpu.pipeline_mode<synchronous>, transform_indices = @transform_9, window_bounds = array<i64: 4, 8, 32>}, {pipeline_mode = #tpu.pipeline_mode<synchronous>, transform_indices = @transform_10, window_bounds = array<i64: 1, 32>}, {transform_indices = @transform_11, window_bounds = array<i64: 1, 8, 32>}]} {
    %c0 = arith.constant 0 : index
    %c0_0 = arith.constant 0 : index
    %c0_1 = arith.constant 0 : index
    %0 = vector.load %arg1[%c0, %c0_0, %c0_1] : memref<1x8x32xf32, #tpu.memory_space<vmem>>, vector<1x8x32xf32>
    %1 = vector.shape_cast %0 : vector<1x8x32xf32> to vector<8x32xf32>
    %2 = arith.truncf %1 : vector<8x32xf32> to vector<8x32xbf16>
    %c0_2 = arith.constant 0 : index
    %c0_3 = arith.constant 0 : index
    %c0_4 = arith.constant 0 : index
    %3 = vector.load %arg2[%c0_2, %c0_3, %c0_4] : memref<1x8x32xf32, #tpu.memory_space<vmem>>, vector<1x8x32xf32>
    %4 = vector.shape_cast %3 : vector<1x8x32xf32> to vector<8x32xf32>
    %5 = arith.truncf %4 : vector<8x32xf32> to vector<8x32xbf16>
    %c0_5 = arith.constant 0 : index
    %c0_6 = arith.constant 0 : index
    %c0_7 = arith.constant 0 : index
    %6 = vector.load %arg3[%c0_5, %c0_6, %c0_7] : memref<1x8x32xf32, #tpu.memory_space<vmem>>, vector<1x8x32xf32>
    %7 = vector.shape_cast %6 : vector<1x8x32xf32> to vector<8x32xf32>
    %8 = arith.truncf %7 : vector<8x32xf32> to vector<8x32xbf16>
    %c0_8 = arith.constant 0 : index
    %c0_9 = arith.constant 0 : index
    %9 = vector.load %arg4[%c0_8, %c0_9] : memref<32x32xbf16, #tpu.memory_space<vmem>>, vector<32x32xbf16>
    %cst = arith.constant dense<0.000000e+00> : vector<8x32xf32>
    %10 = tpu.matmul %2, %9, %cst {dimension_numbers = #tpu.dot_dimension_numbers<[1], [0], [0], [1], [0, 0, 1, 1], [], []>} : vector<8x32xbf16>, vector<32x32xbf16>, vector<8x32xf32> -> vector<8x32xf32>
    %c0_10 = arith.constant 0 : index
    %c0_11 = arith.constant 0 : index
    %11 = vector.load %arg5[%c0_10, %c0_11] : memref<1x32xf32, #tpu.memory_space<vmem>>, vector<1x32xf32>
    %12 = vector.broadcast %11 : vector<1x32xf32> to vector<8x32xf32>
    %13 = arith.addf %10, %12 : vector<8x32xf32>
    %c0_12 = arith.constant 0 : index
    %c0_13 = arith.constant 0 : index
    %14 = vector.load %arg6[%c0_12, %c0_13] : memref<32x32xbf16, #tpu.memory_space<vmem>>, vector<32x32xbf16>
    %cst_14 = arith.constant dense<0.000000e+00> : vector<8x32xf32>
    %15 = tpu.matmul %5, %14, %cst_14 {dimension_numbers = #tpu.dot_dimension_numbers<[1], [0], [0], [1], [0, 0, 1, 1], [], []>} : vector<8x32xbf16>, vector<32x32xbf16>, vector<8x32xf32> -> vector<8x32xf32>
    %c0_15 = arith.constant 0 : index
    %c0_16 = arith.constant 0 : index
    %16 = vector.load %arg7[%c0_15, %c0_16] : memref<1x32xf32, #tpu.memory_space<vmem>>, vector<1x32xf32>
    %17 = vector.broadcast %16 : vector<1x32xf32> to vector<8x32xf32>
    %18 = arith.addf %15, %17 : vector<8x32xf32>
    %c0_17 = arith.constant 0 : index
    %c0_18 = arith.constant 0 : index
    %19 = vector.load %arg8[%c0_17, %c0_18] : memref<32x32xbf16, #tpu.memory_space<vmem>>, vector<32x32xbf16>
    %cst_19 = arith.constant dense<0.000000e+00> : vector<8x32xf32>
    %20 = tpu.matmul %8, %19, %cst_19 {dimension_numbers = #tpu.dot_dimension_numbers<[1], [0], [0], [1], [0, 0, 1, 1], [], []>} : vector<8x32xbf16>, vector<32x32xbf16>, vector<8x32xf32> -> vector<8x32xf32>
    %c0_20 = arith.constant 0 : index
    %c0_21 = arith.constant 0 : index
    %21 = vector.load %arg9[%c0_20, %c0_21] : memref<1x32xf32, #tpu.memory_space<vmem>>, vector<1x32xf32>
    %22 = vector.broadcast %21 : vector<1x32xf32> to vector<8x32xf32>
    %23 = arith.addf %20, %22 : vector<8x32xf32>
    %c0_22 = arith.constant 0 : index
    %c0_23 = arith.constant 0 : index
    %24 = vector.load %arg11[%c0_22, %c0_23] : memref<1x32xf32, #tpu.memory_space<vmem>>, vector<1x32xf32>
    %25 = vector.extract_strided_slice %13 {offsets = [0, 0], sizes = [8, 8], strides = [1, 1]} : vector<8x32xf32> to vector<8x8xf32>
    %26 = arith.truncf %25 : vector<8x8xf32> to vector<8x8xbf16>
    %27 = vector.extract_strided_slice %18 {offsets = [0, 0], sizes = [8, 8], strides = [1, 1]} : vector<8x32xf32> to vector<8x8xf32>
    %28 = arith.truncf %27 : vector<8x8xf32> to vector<8x8xbf16>
    %29 = vector.extract_strided_slice %23 {offsets = [0, 0], sizes = [8, 8], strides = [1, 1]} : vector<8x32xf32> to vector<8x8xf32>
    %30 = arith.truncf %29 : vector<8x8xf32> to vector<8x8xbf16>
    %cst_24 = arith.constant dense<0.000000e+00> : vector<8x8xf32>
    %31 = tpu.matmul %26, %28, %cst_24 {dimension_numbers = #tpu.dot_dimension_numbers<[1], [1], [0], [0], [0, 0, 1, 0], [], []>} : vector<8x8xbf16>, vector<8x8xbf16>, vector<8x8xf32> -> vector<8x8xf32>
    %cst_25 = arith.constant dense<0xFF800000> : vector<8xf32>
    %32 = vector.multi_reduction <maximumf>, %31, %cst_25 [1] : vector<8x8xf32> to vector<8xf32>
    %33 = vector.shape_cast %32 : vector<8xf32> to vector<8x1xf32>
    %34 = vector.broadcast %33 : vector<8x1xf32> to vector<8x8xf32>
    %35 = arith.subf %31, %34 : vector<8x8xf32>
    %36 = math.exp %35 : vector<8x8xf32>
    %cst_26 = arith.constant dense<0.000000e+00> : vector<8xf32>
    %37 = vector.multi_reduction <add>, %36, %cst_26 [1] : vector<8x8xf32> to vector<8xf32>
    %38 = vector.shape_cast %37 : vector<8xf32> to vector<8x1xf32>
    %39 = tpu.reciprocal %38 {approx = true} : vector<8x1xf32> -> vector<8x1xf32>
    %40 = vector.broadcast %39 : vector<8x1xf32> to vector<8x8xf32>
    %41 = arith.mulf %36, %40 : vector<8x8xf32>
    %42 = arith.truncf %41 : vector<8x8xf32> to vector<8x8xbf16>
    %cst_27 = arith.constant dense<0.000000e+00> : vector<8x8xf32>
    %43 = tpu.matmul %42, %30, %cst_27 {dimension_numbers = #tpu.dot_dimension_numbers<[1], [0], [0], [1], [0, 0, 1, 1], [], []>} : vector<8x8xbf16>, vector<8x8xbf16>, vector<8x8xf32> -> vector<8x8xf32>
    %44 = arith.truncf %43 : vector<8x8xf32> to vector<8x8xbf16>
    %c0_28 = arith.constant 0 : index
    %c0_29 = arith.constant 0 : index
    %c0_30 = arith.constant 0 : index
    %45 = vector.load %arg10[%c0_28, %c0_29, %c0_30] : memref<4x8x32xbf16, #tpu.memory_space<vmem>>, vector<1x8x32xbf16>
    %46 = vector.shape_cast %45 : vector<1x8x32xbf16> to vector<8x32xbf16>
    %cst_31 = arith.constant dense<0.000000e+00> : vector<8x32xf32>
    %47 = tpu.matmul %44, %46, %cst_31 {dimension_numbers = #tpu.dot_dimension_numbers<[1], [0], [0], [1], [0, 0, 1, 1], [], []>} : vector<8x8xbf16>, vector<8x32xbf16>, vector<8x32xf32> -> vector<8x32xf32>
    %48 = vector.broadcast %24 : vector<1x32xf32> to vector<8x32xf32>
    %49 = arith.addf %48, %47 : vector<8x32xf32>
    %50 = vector.extract_strided_slice %13 {offsets = [0, 8], sizes = [8, 8], strides = [1, 1]} : vector<8x32xf32> to vector<8x8xf32>
    %51 = arith.truncf %50 : vector<8x8xf32> to vector<8x8xbf16>
    %52 = vector.extract_strided_slice %18 {offsets = [0, 8], sizes = [8, 8], strides = [1, 1]} : vector<8x32xf32> to vector<8x8xf32>
    %53 = arith.truncf %52 : vector<8x8xf32> to vector<8x8xbf16>
    %54 = vector.extract_strided_slice %23 {offsets = [0, 8], sizes = [8, 8], strides = [1, 1]} : vector<8x32xf32> to vector<8x8xf32>
    %55 = arith.truncf %54 : vector<8x8xf32> to vector<8x8xbf16>
    %cst_32 = arith.constant dense<0.000000e+00> : vector<8x8xf32>
    %56 = tpu.matmul %51, %53, %cst_32 {dimension_numbers = #tpu.dot_dimension_numbers<[1], [1], [0], [0], [0, 0, 1, 0], [], []>} : vector<8x8xbf16>, vector<8x8xbf16>, vector<8x8xf32> -> vector<8x8xf32>
    %cst_33 = arith.constant dense<0xFF800000> : vector<8xf32>
    %57 = vector.multi_reduction <maximumf>, %56, %cst_33 [1] : vector<8x8xf32> to vector<8xf32>
    %58 = vector.shape_cast %57 : vector<8xf32> to vector<8x1xf32>
    %59 = vector.broadcast %58 : vector<8x1xf32> to vector<8x8xf32>
    %60 = arith.subf %56, %59 : vector<8x8xf32>
    %61 = math.exp %60 : vector<8x8xf32>
    %cst_34 = arith.constant dense<0.000000e+00> : vector<8xf32>
    %62 = vector.multi_reduction <add>, %61, %cst_34 [1] : vector<8x8xf32> to vector<8xf32>
    %63 = vector.shape_cast %62 : vector<8xf32> to vector<8x1xf32>
    %64 = tpu.reciprocal %63 {approx = true} : vector<8x1xf32> -> vector<8x1xf32>
    %65 = vector.broadcast %64 : vector<8x1xf32> to vector<8x8xf32>
    %66 = arith.mulf %61, %65 : vector<8x8xf32>
    %67 = arith.truncf %66 : vector<8x8xf32> to vector<8x8xbf16>
    %cst_35 = arith.constant dense<0.000000e+00> : vector<8x8xf32>
    %68 = tpu.matmul %67, %55, %cst_35 {dimension_numbers = #tpu.dot_dimension_numbers<[1], [0], [0], [1], [0, 0, 1, 1], [], []>} : vector<8x8xbf16>, vector<8x8xbf16>, vector<8x8xf32> -> vector<8x8xf32>
    %69 = arith.truncf %68 : vector<8x8xf32> to vector<8x8xbf16>
    %c1 = arith.constant 1 : index
    %c0_36 = arith.constant 0 : index
    %c0_37 = arith.constant 0 : index
    %70 = vector.load %arg10[%c1, %c0_36, %c0_37] : memref<4x8x32xbf16, #tpu.memory_space<vmem>>, vector<1x8x32xbf16>
    %71 = vector.shape_cast %70 : vector<1x8x32xbf16> to vector<8x32xbf16>
    %cst_38 = arith.constant dense<0.000000e+00> : vector<8x32xf32>
    %72 = tpu.matmul %69, %71, %cst_38 {dimension_numbers = #tpu.dot_dimension_numbers<[1], [0], [0], [1], [0, 0, 1, 1], [], []>} : vector<8x8xbf16>, vector<8x32xbf16>, vector<8x32xf32> -> vector<8x32xf32>
    %73 = arith.addf %49, %72 : vector<8x32xf32>
    %74 = vector.extract_strided_slice %13 {offsets = [0, 16], sizes = [8, 8], strides = [1, 1]} : vector<8x32xf32> to vector<8x8xf32>
    %75 = arith.truncf %74 : vector<8x8xf32> to vector<8x8xbf16>
    %76 = vector.extract_strided_slice %18 {offsets = [0, 16], sizes = [8, 8], strides = [1, 1]} : vector<8x32xf32> to vector<8x8xf32>
    %77 = arith.truncf %76 : vector<8x8xf32> to vector<8x8xbf16>
    %78 = vector.extract_strided_slice %23 {offsets = [0, 16], sizes = [8, 8], strides = [1, 1]} : vector<8x32xf32> to vector<8x8xf32>
    %79 = arith.truncf %78 : vector<8x8xf32> to vector<8x8xbf16>
    %cst_39 = arith.constant dense<0.000000e+00> : vector<8x8xf32>
    %80 = tpu.matmul %75, %77, %cst_39 {dimension_numbers = #tpu.dot_dimension_numbers<[1], [1], [0], [0], [0, 0, 1, 0], [], []>} : vector<8x8xbf16>, vector<8x8xbf16>, vector<8x8xf32> -> vector<8x8xf32>
    %cst_40 = arith.constant dense<0xFF800000> : vector<8xf32>
    %81 = vector.multi_reduction <maximumf>, %80, %cst_40 [1] : vector<8x8xf32> to vector<8xf32>
    %82 = vector.shape_cast %81 : vector<8xf32> to vector<8x1xf32>
    %83 = vector.broadcast %82 : vector<8x1xf32> to vector<8x8xf32>
    %84 = arith.subf %80, %83 : vector<8x8xf32>
    %85 = math.exp %84 : vector<8x8xf32>
    %cst_41 = arith.constant dense<0.000000e+00> : vector<8xf32>
    %86 = vector.multi_reduction <add>, %85, %cst_41 [1] : vector<8x8xf32> to vector<8xf32>
    %87 = vector.shape_cast %86 : vector<8xf32> to vector<8x1xf32>
    %88 = tpu.reciprocal %87 {approx = true} : vector<8x1xf32> -> vector<8x1xf32>
    %89 = vector.broadcast %88 : vector<8x1xf32> to vector<8x8xf32>
    %90 = arith.mulf %85, %89 : vector<8x8xf32>
    %91 = arith.truncf %90 : vector<8x8xf32> to vector<8x8xbf16>
    %cst_42 = arith.constant dense<0.000000e+00> : vector<8x8xf32>
    %92 = tpu.matmul %91, %79, %cst_42 {dimension_numbers = #tpu.dot_dimension_numbers<[1], [0], [0], [1], [0, 0, 1, 1], [], []>} : vector<8x8xbf16>, vector<8x8xbf16>, vector<8x8xf32> -> vector<8x8xf32>
    %93 = arith.truncf %92 : vector<8x8xf32> to vector<8x8xbf16>
    %c2 = arith.constant 2 : index
    %c0_43 = arith.constant 0 : index
    %c0_44 = arith.constant 0 : index
    %94 = vector.load %arg10[%c2, %c0_43, %c0_44] : memref<4x8x32xbf16, #tpu.memory_space<vmem>>, vector<1x8x32xbf16>
    %95 = vector.shape_cast %94 : vector<1x8x32xbf16> to vector<8x32xbf16>
    %cst_45 = arith.constant dense<0.000000e+00> : vector<8x32xf32>
    %96 = tpu.matmul %93, %95, %cst_45 {dimension_numbers = #tpu.dot_dimension_numbers<[1], [0], [0], [1], [0, 0, 1, 1], [], []>} : vector<8x8xbf16>, vector<8x32xbf16>, vector<8x32xf32> -> vector<8x32xf32>
    %97 = arith.addf %73, %96 : vector<8x32xf32>
    %98 = vector.extract_strided_slice %13 {offsets = [0, 24], sizes = [8, 8], strides = [1, 1]} : vector<8x32xf32> to vector<8x8xf32>
    %99 = arith.truncf %98 : vector<8x8xf32> to vector<8x8xbf16>
    %100 = vector.extract_strided_slice %18 {offsets = [0, 24], sizes = [8, 8], strides = [1, 1]} : vector<8x32xf32> to vector<8x8xf32>
    %101 = arith.truncf %100 : vector<8x8xf32> to vector<8x8xbf16>
    %102 = vector.extract_strided_slice %23 {offsets = [0, 24], sizes = [8, 8], strides = [1, 1]} : vector<8x32xf32> to vector<8x8xf32>
    %103 = arith.truncf %102 : vector<8x8xf32> to vector<8x8xbf16>
    %cst_46 = arith.constant dense<0.000000e+00> : vector<8x8xf32>
    %104 = tpu.matmul %99, %101, %cst_46 {dimension_numbers = #tpu.dot_dimension_numbers<[1], [1], [0], [0], [0, 0, 1, 0], [], []>} : vector<8x8xbf16>, vector<8x8xbf16>, vector<8x8xf32> -> vector<8x8xf32>
    %cst_47 = arith.constant dense<0xFF800000> : vector<8xf32>
    %105 = vector.multi_reduction <maximumf>, %104, %cst_47 [1] : vector<8x8xf32> to vector<8xf32>
    %106 = vector.shape_cast %105 : vector<8xf32> to vector<8x1xf32>
    %107 = vector.broadcast %106 : vector<8x1xf32> to vector<8x8xf32>
    %108 = arith.subf %104, %107 : vector<8x8xf32>
    %109 = math.exp %108 : vector<8x8xf32>
    %cst_48 = arith.constant dense<0.000000e+00> : vector<8xf32>
    %110 = vector.multi_reduction <add>, %109, %cst_48 [1] : vector<8x8xf32> to vector<8xf32>
    %111 = vector.shape_cast %110 : vector<8xf32> to vector<8x1xf32>
    %112 = tpu.reciprocal %111 {approx = true} : vector<8x1xf32> -> vector<8x1xf32>
    %113 = vector.broadcast %112 : vector<8x1xf32> to vector<8x8xf32>
    %114 = arith.mulf %109, %113 : vector<8x8xf32>
    %115 = arith.truncf %114 : vector<8x8xf32> to vector<8x8xbf16>
    %cst_49 = arith.constant dense<0.000000e+00> : vector<8x8xf32>
    %116 = tpu.matmul %115, %103, %cst_49 {dimension_numbers = #tpu.dot_dimension_numbers<[1], [0], [0], [1], [0, 0, 1, 1], [], []>} : vector<8x8xbf16>, vector<8x8xbf16>, vector<8x8xf32> -> vector<8x8xf32>
    %117 = arith.truncf %116 : vector<8x8xf32> to vector<8x8xbf16>
    %c3 = arith.constant 3 : index
    %c0_50 = arith.constant 0 : index
    %c0_51 = arith.constant 0 : index
    %118 = vector.load %arg10[%c3, %c0_50, %c0_51] : memref<4x8x32xbf16, #tpu.memory_space<vmem>>, vector<1x8x32xbf16>
    %119 = vector.shape_cast %118 : vector<1x8x32xbf16> to vector<8x32xbf16>
    %cst_52 = arith.constant dense<0.000000e+00> : vector<8x32xf32>
    %120 = tpu.matmul %117, %119, %cst_52 {dimension_numbers = #tpu.dot_dimension_numbers<[1], [0], [0], [1], [0, 0, 1, 1], [], []>} : vector<8x8xbf16>, vector<8x32xbf16>, vector<8x32xf32> -> vector<8x32xf32>
    %121 = arith.addf %97, %120 : vector<8x32xf32>
    %c0_53 = arith.constant 0 : index
    %c0_54 = arith.constant 0 : index
    %c0_55 = arith.constant 0 : index
    %122 = vector.load %arg12[%c0_53, %c0_54, %c0_55] : memref<1x8x32xf32, #tpu.memory_space<vmem>>, vector<1x8x32xf32>
    %123 = vector.shape_cast %122 : vector<1x8x32xf32> to vector<8x32xf32>
    %124 = vector.shape_cast %121 : vector<8x32xf32> to vector<1x8x32xf32>
    tpu.vector_store %arg12[%c0_53, %c0_54, %c0_55], %124 {strides = array<i32>} : memref<1x8x32xf32, #tpu.memory_space<vmem>>, vector<1x8x32xf32>,
    return
  }
  func.func @transform_0(%arg0: i32) -> (i32, i32, i32) {
    %c0_i32 = arith.constant 0 : i32
    %c0_i32_0 = arith.constant 0 : i32
    %c0_i32_1 = arith.constant 0 : i32
    return %arg0, %c0_i32, %c0_i32_0 : i32, i32, i32
  }
  func.func @transform_1(%arg0: i32) -> (i32, i32, i32) {
    %c0_i32 = arith.constant 0 : i32
    %c0_i32_0 = arith.constant 0 : i32
    %c0_i32_1 = arith.constant 0 : i32
    return %arg0, %c0_i32, %c0_i32_0 : i32, i32, i32
  }
  func.func @transform_2(%arg0: i32) -> (i32, i32, i32) {
    %c0_i32 = arith.constant 0 : i32
    %c0_i32_0 = arith.constant 0 : i32
    %c0_i32_1 = arith.constant 0 : i32
    return %arg0, %c0_i32, %c0_i32_0 : i32, i32, i32
  }
  func.func @transform_3(%arg0: i32) -> (i32, i32) {
    %c0_i32 = arith.constant 0 : i32
    %c0_i32_0 = arith.constant 0 : i32
    %c0_i32_1 = arith.constant 0 : i32
    return %c0_i32, %c0_i32_0 : i32, i32
  }
  func.func @transform_4(%arg0: i32) -> (i32, i32) {
    %c0_i32 = arith.constant 0 : i32
    %c0_i32_0 = arith.constant 0 : i32
    %c0_i32_1 = arith.constant 0 : i32
    return %c0_i32, %c0_i32_0 : i32, i32
  }
  func.func @transform_5(%arg0: i32) -> (i32, i32) {
    %c0_i32 = arith.constant 0 : i32
    %c0_i32_0 = arith.constant 0 : i32
    %c0_i32_1 = arith.constant 0 : i32
    return %c0_i32, %c0_i32_0 : i32, i32
  }
  func.func @transform_6(%arg0: i32) -> (i32, i32) {
    %c0_i32 = arith.constant 0 : i32
    %c0_i32_0 = arith.constant 0 : i32
    %c0_i32_1 = arith.constant 0 : i32
    return %c0_i32, %c0_i32_0 : i32, i32
  }
  func.func @transform_7(%arg0: i32) -> (i32, i32) {
    %c0_i32 = arith.constant 0 : i32
    %c0_i32_0 = arith.constant 0 : i32
    %c0_i32_1 = arith.constant 0 : i32
    return %c0_i32, %c0_i32_0 : i32, i32
  }
  func.func @transform_8(%arg0: i32) -> (i32, i32) {
    %c0_i32 = arith.constant 0 : i32
    %c0_i32_0 = arith.constant 0 : i32
    %c0_i32_1 = arith.constant 0 : i32
    return %c0_i32, %c0_i32_0 : i32, i32
  }
  func.func @transform_9(%arg0: i32) -> (i32, i32, i32) {
    %c0_i32 = arith.constant 0 : i32
    %c0_i32_0 = arith.constant 0 : i32
    %c0_i32_1 = arith.constant 0 : i32
    %c0_i32_2 = arith.constant 0 : i32
    return %c0_i32, %c0_i32_0, %c0_i32_1 : i32, i32, i32
  }
  func.func @transform_10(%arg0: i32) -> (i32, i32) {
    %c0_i32 = arith.constant 0 : i32
    %c0_i32_0 = arith.constant 0 : i32
    %c0_i32_1 = arith.constant 0 : i32
    return %c0_i32, %c0_i32_0 : i32, i32
  }
  func.func @transform_11(%arg0: i32) -> (i32, i32, i32) {
    %c0_i32 = arith.constant 0 : i32
    %c0_i32_0 = arith.constant 0 : i32
    %c0_i32_1 = arith.constant 0 : i32
    return %arg0, %c0_i32, %c0_i32_0 : i32, i32, i32
  }
}

</mosaic_0001>

<bundles_post_ra>
// kernel: tpu_custom_call.1
= control target key start
LH: loop header
LB: loop body
LE: loop exit
PB: predicated region body
PF: predicated region fallthrough
CT: control target
= control target key end

     0   :  { %s2636_s0 = inlined_call_operand.hbm [shape: f32[2,8,32], index: 0, kind: input, shape index: {}]   ;;  %s2637_s1 = inlined_call_operand.hbm [shape: f32[2,8,32], index: 1, kind: input, shape index: {}]   ;;  %s2638_s2 = inlined_call_operand.hbm [shape: f32[2,8,32], index: 2, kind: input, shape index: {}]   ;;  %s2639_s3 = inlined_call_operand.hbm [shape: bf16[32,32], index: 3, kind: input, shape index: {}]   ;;  %s2640_s4 = inlined_call_operand.vmem [shape: f32[1,32], index: 4, kind: input, shape index: {}]   ;;  %s2641_s5 = inlined_call_operand.vmem [shape: bf16[32,32], index: 5, kind: input, shape index: {}]   ;;  %s2642_s6 = inlined_call_operand.vmem [shape: f32[1,32], index: 6, kind: input, shape index: {}]   ;;  %s2643_s7 = inlined_call_operand.hbm [shape: bf16[32,32], index: 7, kind: input, shape index: {}]   ;;  %s2644_s8 = inlined_call_operand.hbm [shape: f32[1,32], index: 8, kind: input, shape index: {}]   ;;  %s2645_s9 = inlined_call_operand.vmem [shape: bf16[4,8,32], index: 9, kind: input, shape index: {}]   ;;  %s2646_s10 = inlined_call_operand.vmem [shape: f32[1,32], index: 10, kind: input, shape index: {}]   ;;  %s2647_s11 = inlined_call_operand.hbm [shape: f32[2,8,32], index: 11, kind: output, shape index: {}]  }
   0x1   :  { %2672 = sst [smem:[#allocation25_spill]] %s2637_s1 }
   0x2   :  { %2673 = sst [smem:[#allocation26_spill]] %s2639_s3 }
   0x3   :  { %2674 = sst [smem:[#allocation27_spill]] %s2640_s4 }
   0x4   :  { %2675 = sst [smem:[#allocation28_spill]] %s2645_s9 }
   0x5   :  { %2676 = sst [smem:[#allocation29_spill]] %s2646_s10 }
   0x6   :  { %2677 = sst [smem:[#allocation30_spill]] %s2647_s11 }
   0x7   :  { %16 = vsyncpa [#allocation3], 0 }
   0x8   :  { %18 = vsyncpa [#allocation3 + $0x1], 0 }
   0x9   :  { %19 = vsyncpa [#allocation6], 0 }
   0xa   :  { %21 = vsyncpa [#allocation6 + $0x1], 0 }
   0xb   :  { %22 = vsyncpa [#allocation9], 0 }
   0xc   :  { %23 = vsyncpa [#allocation12], 0 }
   0xd   :  { %24 = vsyncpa [#allocation4], 0 }
   0xe   :  { %26 = vsyncpa [#allocation4 + $0x1], 0  ;;  %s2164_s17 = smov 0   ;;  %s2166_s18 = smov 0  }
   0xf   :  { %s2168_s19 = smov 0   ;;  %s2170_s20 = smov 0  }
  0x10 LB: > { %2678 = sst [smem:[#allocation19_spill]] %s2076_s17  ;;  %s2185_s21 = sadd.s32 4294967295, %s2088_s20   ;;  %s2088_s20 = sphi %s2170_s20, %s2720_s20   ;;  %s2084_s19 = sphi %s2168_s19, %s2724_s19   ;;  %s2080_s18 = sphi %s2166_s18, %s2723_s18   ;;  %s2076_s17 = sphi %s2164_s17, %s2722_s17  }
  0x11   : > { %2679 = sst [smem:[#allocation20_spill]] %s2088_s20  ;;  %s1526_s22 = sadd.s32 4294967294, %s2088_s20  }
  0x12   : > { %p52_p0 = scmp.ne.s32.totalorder %s2080_s18, %s2076_s17  ;;  %p2650_p1 = scmp.eq.s32.totalorder %s2185_s21, 0 }
  0x13   : > { %p302_p3 = scmp.eq.s32.totalorder %s1526_s22, 1  ;;  %p1527_p5 = scmp.ge.s32.totalorder %s2088_s20, 1 }
  0x14   : > { %p2194_p4 = por %p2650_p1, %p52_p0  ;;  %p309_p7 = scmp.lt.s32.totalorder %s2088_s20, 3 }
  0x15   : > { %p2199_p6 = por %p302_p3, %p52_p0  ;;  %s2090_s26 = smov [#allocation8]  }
  0x16   : > { %s2680_s23 = scalar_select %p2194_p4, 1, 0 }
  0x17   : > { %s2681_s24 = scalar_select %p2199_p6, 1, 0 }
  0x18   : > { %p2204_p8 = pnand %p1527_p5, %p309_p7  ;;  %s321_s27 = sshll.u32 %s2090_s26, 4  ;;  %s2208_s27 = int_to_ptr.vmem [resolvable:$true] %s321_s27 }
  0x19   : > { %2682 = sst [smem:[#allocation21_spill]] %s2681_s24  ;;  %s2220_s29 = sadd.s32 1, %s2088_s20  }
  0x1a   : > { %s2683_s25 = scalar_select %p2204_p8, 1, 0 }
  0x1b   : > { %p1740_p9 = pneg %p2204_p8  ;;  %2685 = sst [smem:[#allocation22_spill]] %s2220_s29 }
  0x1c   : > { %s39_s30 = sadd.s32 1, %s2084_s19  ;;  %s36_s12 = ssub.s32 %s2088_s20, %s2220_s29 }
  0x1d   : > { %p2215_p11 = pnand %p1740_p9, %p2650_p1  ;;  %s2686_s3 = sld [smem:[#allocation26_spill]] }
  0x1f   : > { %s2684_s28 = scalar_select %p2215_p11, 1, 0 }
  0x20   : > { %p2233_p13 = pneg %p2215_p11 }
  0x22   : > { %s2687_s26 = scalar_select %p2233_p13, 1, 0 }
  0x23   : > { %s1836_s15 = scalar_lea.hbm %s2686_s3, 256 }
  0x24   : > { %p1837_p12 = scmp.ne.s32.totalorder %s2686_s3, %s1836_s15  ;;  %p1843_p5 = scmp.lt.u32.totalorder %s1836_s15, %s2686_s3 }
  0x26   : > { %p1839_p0 = pnand %p2233_p13, %p1837_p12 }
  0x28   : > { %p1840_p3 = pneg %p1839_p0 }
  0x2a   : > { %p1845_p7 = pnand %p1843_p5, %p1840_p3 }
  0x2c   : > { %1848 = shalt.err (!%p1845_p7)
}
  0x2d   : > { %s1849_s13 = scalar_lea.vmem %s2208_s27, 256  ;;  %p1857_p2 = scmp.lt.s32.totalorder %s2208_s27, %s2208_s27 }
  0x2e   : > { %p1850_p9 = scmp.ne.s32.totalorder %s2208_s27, %s1849_s13  ;;  %p1858_p6 = scmp.lt.s32.totalorder %s1849_s13, %s1849_s13 }
  0x30   : > { %p1852_p10 = pnand %p1850_p9, %p2233_p13  ;;  %p1859_p12 = por %p1858_p6, %p1857_p2 }
  0x32   : > { %p1853_p1 = pneg %p1852_p10 }
  0x34   : > { %p1860_p0 = pnand %p1859_p12, %p1853_p1 }
  0x36   : > { %1863 = shalt.err (!%p1860_p0)
}
  0x37   : > { %s2654_s14 = smov 64   ;;  %s2655_s17 = smov 4  }
  0x38   : > { %1743 = dma.hbm_to_vmem [thread:$0]  (!%p2215_p11), %s2686_s3, 256, %s2208_s27, [#allocation9], %s2654_s14, %s2654_s14, %s2655_s17  }
  0x39   : > { %p37_p1 = scmp.eq.s32.totalorder %s36_s12, 0  ;;  %p46_p2 = scmp.ne.s32.totalorder %s2084_s19, %s2080_s18 }
  0x3a   : > { %p47_p6 = scmp.eq.s32.totalorder %s2088_s20, 0  ;;  %p1767_p10 = scmp.lt.s32.totalorder %s2088_s20, 2 }
  0x3b   : > { %s2262_s16 = scalar_select %p37_p1, %s2084_s19, %s39_s30  }
  0x3c   : > { %p48_p3 = por %p47_p6, %p46_p2  ;;  %p2689_p5 = scmp.eq.s32.totalorder %s2185_s21, 1 }
  0x3d   : > { %2688 = sst [smem:[#allocation23_spill]] %s2262_s16  ;;  %s2656_s13 = sand.u32 1, %s2084_s19  }
  0x3e   : > { %p2266_p7 = por %p2689_p5, %p46_p2  ;;  %s2272_s29 = sshll.u32 %s2088_s20, 7 }
  0x3f   : > { %s2276_s11 = sshll.u32 %s2656_s13, 3  ;;  %p2278_p9 = pnand %p1767_p10, %p48_p3 }
  0x40   : > { %s2690_s22 = scalar_select %p2266_p7, 1, 0 }
  0x41   : > { %s2692_s27 = scalar_select %p2278_p9, 1, 0 }
  0x42   : > { %2691 = sst [smem:[#allocation24_spill]] %s2690_s22  ;;  %s392_s30 = sand.u32 1, %s2088_s20  }
  0x43   : > { %s2693_s1 = sld [smem:[#allocation25_spill]]  ;;  %s396_s14 = scalar_lea.vmem [#allocation5], %s2276_s11 }
  0x44   : > { %s403_s17 = sshll.u32 %s396_s14, 4  ;;  %s2292_s13 = scalar_lea.sflag [#allocation6], %s392_s30  ;;  %s2290_s17 = int_to_ptr.vmem [resolvable:$true] %s403_s17 }
  0x45   : > { %p2298_p0 = pneg %p2278_p9 }
  0x47   : > { %s2694_s16 = scalar_select %p2298_p0, 1, 0 }
  0x49   : > { %s2287_s15 = scalar_lea.hbm %s2693_s1, %s2272_s29  ;;  %s1869_s20 = scalar_lea.hbm %s2693_s1, 256 }
  0x4a   : > { %s1864_s3 = scalar_lea.hbm %s2287_s15, 128  ;;  %p1870_p6 = scmp.lt.u32.totalorder %s2287_s15, %s2693_s1 }
  0x4b   : > { %p1865_p12 = scmp.ne.s32.totalorder %s2287_s15, %s1864_s3  ;;  %p1871_p10 = scmp.lt.u32.totalorder %s1869_s20, %s1864_s3 }
  0x4c   : > { %p1873_p5 = scmp.lt.u32.totalorder %s1864_s3, %s2287_s15 }
  0x4d   : > { %p1867_p1 = pnand %p2298_p0, %p1865_p12  ;;  %p1872_p3 = por %p1871_p10, %p1870_p6 }
  0x4f   : > { %p1868_p2 = pneg %p1867_p1  ;;  %p1874_p7 = por %p1873_p5, %p1872_p3 }
  0x51   : > { %p1875_p4 = pnand %p1874_p7, %p1868_p2 }
  0x53   : > { %1878 = shalt.err (!%p1875_p4)
}
  0x54   : > { %s1879_s30 = scalar_lea.vmem %s2290_s17, 128  ;;  %s2093_s12 = smov [#allocation5]  }
  0x55   : > { %p1880_p12 = scmp.ne.s32.totalorder %s2290_s17, %s1879_s30  ;;  %s1884_s24 = sshll.u32 %s2093_s12, 4  ;;  %s1885_s24 = int_to_ptr.vmem [resolvable:$false] %s1884_s24 }
  0x56   : > { %s1886_s22 = scalar_lea.vmem %s1885_s24, 256  ;;  %p1887_p11 = scmp.lt.s32.totalorder %s2290_s17, %s1885_s24 }
  0x57   : > { %p1882_p1 = pnand %p1880_p12, %p2298_p0  ;;  %p1888_p13 = scmp.lt.s32.totalorder %s1886_s22, %s1879_s30 }
  0x59   : > { %p1883_p8 = pneg %p1882_p1  ;;  %p1889_p6 = por %p1888_p13, %p1887_p11 }
  0x5b   : > { %p1890_p10 = pnand %p1889_p6, %p1883_p8 }
  0x5d   : > { %1893 = shalt.err (!%p1890_p10)
}
  0x5e   : > { %1756 = dma.hbm_to_vmem [thread:$0]  (!%p2278_p9), %s2287_s15, 128, %s2290_s17, %s2292_s13  }
  0x5f   : > { %s2094_s3 = smov [#allocation10]   ;;  %s2095_s14 = smov [#allocation11]  }
  0x60   : > { %s343_s20 = sshll.u32 %s2094_s3, 4  ;;  %s357_s1 = sshll.u32 %s2095_s14, 4  ;;  %s344_s20 = int_to_ptr.vmem [resolvable:$true] %s343_s20  ;;  %s358_s1 = int_to_ptr.vmem [resolvable:$true] %s357_s1 }
  0x61   : > { %s1894_s24 = scalar_lea.hbm %s2643_s7, 256  ;;  %p2695_p8 = scmp.ne.s32.totalorder %s2687_s26, 0 }
  0x62   : > { %p1895_p4 = scmp.ne.s32.totalorder %s2643_s7, %s1894_s24  ;;  %p1901_p7 = scmp.lt.u32.totalorder %s1894_s24, %s2643_s7 }
  0x64   : > { %p1897_p11 = pnand %p1895_p4, %p2695_p8 }
  0x66   : > { %p1898_p13 = pneg %p1897_p11 }
  0x68   : > { %p1903_p2 = pnand %p1901_p7, %p1898_p13 }
  0x6a   : > { %1906 = shalt.err (!%p1903_p2)
}
  0x6b   : > { %s1907_s17 = scalar_lea.vmem %s344_s20, 256  ;;  %p1915_p1 = scmp.lt.s32.totalorder %s344_s20, %s344_s20 }
  0x6c   : > { %p1908_p3 = scmp.ne.s32.totalorder %s344_s20, %s1907_s17  ;;  %p1916_p6 = scmp.lt.s32.totalorder %s1907_s17, %s1907_s17 }
  0x6e   : > { %p1910_p5 = pnand %p1908_p3, %p2695_p8  ;;  %p1917_p10 = por %p1916_p6, %p1915_p1 }
  0x70   : > { %p1911_p12 = pneg %p1910_p5 }
  0x72   : > { %p1918_p9 = pnand %p1917_p10, %p1911_p12 }
  0x74   : > { %1921 = shalt.err (!%p1918_p9)
}
  0x75   : > { %p2696_p4 = scmp.ne.s32.totalorder %s2684_s28, 0  ;;  %s2697_s10 = smov 4  }
  0x76   : > { %s2698_s15 = smov 64   ;;  %s1922_s12 = scalar_lea.hbm %s2644_s8, 16 }
  0x77   : > { %1746 = dma.hbm_to_vmem [thread:$0]  (!%p2696_p4), %s2643_s7, 256, %s344_s20, [#allocation9], %s2698_s15, %s2698_s15, %s2697_s10  }
  0x78   : > { %p1923_p11 = scmp.ne.s32.totalorder %s2644_s8, %s1922_s12  ;;  %p1929_p7 = scmp.lt.u32.totalorder %s1922_s12, %s2644_s8 }
  0x7a   : > { %p1925_p9 = pnand %p1923_p11, %p2695_p8 }
  0x7c   : > { %p1926_p13 = pneg %p1925_p9 }
  0x7e   : > { %p1931_p2 = pnand %p1929_p7, %p1926_p13 }
  0x80   : > { %1934 = shalt.err (!%p1931_p2)
}
  0x81   : > { %s1935_s4 = scalar_lea.vmem %s358_s1, 16  ;;  %s1942_s20 = scalar_lea.vmem %s358_s1, 32 }
  0x82   : > { %p1936_p3 = scmp.ne.s32.totalorder %s358_s1, %s1935_s4  ;;  %p1943_p1 = scmp.lt.s32.totalorder %s358_s1, %s358_s1 }
  0x83   : > { %p1944_p6 = scmp.lt.s32.totalorder %s1942_s20, %s1935_s4 }
  0x84   : > { %p1938_p5 = pnand %p1936_p3, %p2695_p8 }
  0x85   : > { %p1945_p10 = por %p1944_p6, %p1943_p1 }
  0x86   : > { %p1939_p12 = pneg %p1938_p5 }
  0x88   : > { %p1946_p0 = pnand %p1945_p10, %p1939_p12 }
  0x8a   : > { %1949 = shalt.err (!%p1946_p0)
}
  0x8b   : > { %1749 = dma.hbm_to_vmem [thread:$0]  (!%p2696_p4), %s2644_s8, 16, %s358_s1, [#allocation12]  }
  0x8c   : > { %s2365_s3 = scalar_lea.hbm %s2636_s0, %s2272_s29  ;;  %s378_s14 = scalar_lea.vmem [#allocation2], %s2276_s11 }
  0x8d   : > { %s385_s28 = sshll.u32 %s378_s14, 4  ;;  %s2374_s30 = scalar_lea.hbm %s2638_s2, %s2272_s29  ;;  %s2368_s28 = int_to_ptr.vmem [resolvable:$true] %s385_s28 }
  0x8e   : > { %s2699_s22 = sand.u32 1, %s2084_s19   ;;  %s1950_s17 = scalar_lea.hbm %s2365_s3, 128 }
  0x8f   : > { %s375_s1 = scalar_lea.sflag [#allocation3], %s2699_s22  ;;  %p1951_p0 = scmp.ne.s32.totalorder %s2365_s3, %s1950_s17 }
  0x90   : > { %p2700_p8 = scmp.ne.s32.totalorder %s2694_s16, 0  ;;  %s1955_s10 = scalar_lea.hbm %s2636_s0, 256 }
  0x91   : > { %p1956_p9 = scmp.lt.u32.totalorder %s2365_s3, %s2636_s0  ;;  %p1957_p13 = scmp.lt.u32.totalorder %s1955_s10, %s1950_s17 }
  0x92   : > { %p1953_p4 = pnand %p1951_p0, %p2700_p8  ;;  %p1959_p2 = scmp.lt.u32.totalorder %s1950_s17, %s2365_s3 }
  0x93   : > { %p1958_p7 = por %p1957_p13, %p1956_p9 }
  0x94   : > { %p1954_p11 = pneg %p1953_p4 }
  0x95   : > { %p1960_p3 = por %p1959_p2, %p1958_p7 }
  0x97   : > { %p1961_p5 = pnand %p1960_p3, %p1954_p11 }
  0x99   : > { %1964 = shalt.err (!%p1961_p5)
}
  0x9a   : > { %s1965_s29 = scalar_lea.vmem %s2368_s28, 128  ;;  %s2096_s9 = smov [#allocation2]  }
  0x9b   : > { %p1966_p12 = scmp.ne.s32.totalorder %s2368_s28, %s1965_s29  ;;  %s1970_s14 = sshll.u32 %s2096_s9, 4  ;;  %s1971_s14 = int_to_ptr.vmem [resolvable:$false] %s1970_s14 }
  0x9c   : > { %s1972_s12 = scalar_lea.vmem %s1971_s14, 256  ;;  %p1973_p10 = scmp.lt.s32.totalorder %s2368_s28, %s1971_s14 }
  0x9d   : > { %p1968_p1 = pnand %p1966_p12, %p2700_p8  ;;  %p1974_p0 = scmp.lt.s32.totalorder %s1972_s12, %s1965_s29 }
  0x9f   : > { %p1969_p6 = pneg %p1968_p1  ;;  %p1975_p4 = por %p1974_p0, %p1973_p10 }
  0xa1   : > { %p1976_p9 = pnand %p1975_p4, %p1969_p6 }
  0xa3   : > { %1979 = shalt.err (!%p1976_p9)
}
  0xa4   : > { %p2701_p11 = scmp.ne.s32.totalorder %s2692_s27, 0  ;;  %s414_s24 = scalar_lea.vmem [#allocation7], %s2276_s11 }
  0xa5   : > { %s421_s22 = sshll.u32 %s414_s24, 4  ;;  %s1980_s17 = scalar_lea.hbm %s2374_s30, 128  ;;  %s422_s22 = int_to_ptr.vmem [resolvable:$true] %s421_s22 }
  0xa6   : > { %1753 = dma.hbm_to_vmem [thread:$0]  (!%p2701_p11), %s2365_s3, 128, %s2368_s28, %s375_s1  }
  0xa7   : > { %p1981_p13 = scmp.ne.s32.totalorder %s2374_s30, %s1980_s17  ;;  %s1985_s10 = scalar_lea.hbm %s2638_s2, 256 }
  0xa8   : > { %p1986_p3 = scmp.lt.u32.totalorder %s2374_s30, %s2638_s2  ;;  %p1987_p5 = scmp.lt.u32.totalorder %s1985_s10, %s1980_s17 }
  0xa9   : > { %p1983_p7 = pnand %p1981_p13, %p2700_p8  ;;  %p1989_p1 = scmp.lt.u32.totalorder %s1980_s17, %s2374_s30 }
  0xaa   : > { %p1988_p12 = por %p1987_p5, %p1986_p3 }
  0xab   : > { %p1984_p2 = pneg %p1983_p7 }
  0xac   : > { %p1990_p6 = por %p1989_p1, %p1988_p12 }
  0xae   : > { %p1991_p10 = pnand %p1990_p6, %p1984_p2 }
  0xb0   : > { %1994 = shalt.err (!%p1991_p10)
}
  0xb1   : > { %s1995_s11 = scalar_lea.vmem %s422_s22, 128  ;;  %s2097_s3 = smov [#allocation7]  }
  0xb2   : > { %p1996_p0 = scmp.ne.s32.totalorder %s422_s22, %s1995_s11  ;;  %s2000_s28 = sshll.u32 %s2097_s3, 4  ;;  %s2001_s28 = int_to_ptr.vmem [resolvable:$false] %s2000_s28 }
  0xb3   : > { %s2002_s1 = scalar_lea.vmem %s2001_s28, 256  ;;  %p2003_p13 = scmp.lt.s32.totalorder %s422_s22, %s2001_s28 }
  0xb4   : > { %p1998_p4 = pnand %p1996_p0, %p2700_p8  ;;  %p2004_p7 = scmp.lt.s32.totalorder %s2002_s1, %s1995_s11 }
  0xb6   : > { %p1999_p9 = pneg %p1998_p4  ;;  %p2005_p11 = por %p2004_p7, %p2003_p13 }
  0xb8   : > { %p2006_p3 = pnand %p2005_p11, %p1999_p9 }
  0xba   : > { %2009 = shalt.err (!%p2006_p3)
}
  0xbb   : > { %p2702_p5 = scmp.ne.s32.totalorder %s2692_s27, 0  ;;  %p2703_p2 = scmp.ne.s32.totalorder %s2683_s25, 0 }
  0xbc   : > { %s2421_s16 = sand.u32 (!%p2703_p2), 1, %s2080_s18   ;;  %p2704_p8 = scmp.ne.s32.totalorder (!%p2703_p2), %s2680_s23, 0 }
  0xbd   : > { %1759 = dma.hbm_to_vmem [thread:$0]  (!%p2702_p5), %s2374_s30, 128, %s422_s22, %s2292_s13  }
  0xbe   : > { %430 = sbr.rel (%p2703_p2) target bundleno = 2491 (0x9bb), region = 64  ;;  %s2424_s29 = sshll.u32 (!%p2703_p2), %s2421_s16, 3 }
  0xbf   : > { %s433_s9 = scalar_lea.sflag (!%p2703_p2), [#allocation3], %s2421_s16  ;;  %s436_s14 = scalar_lea.vmem (!%p2703_p2), [#allocation2], %s2424_s29 }
  0xc5   : > { %2055 = dma.done.wait (%p2704_p8), %s433_s9, 128  }
  0xc6   : > { %2057 = vsyncadd (%p2704_p8), %s433_s9, 4294967168  ;;  %s441_s25 = sand.u32 1, %s2185_s21   ;;  %s445_s27 = scalar_lea.vmem [#allocation5], %s2424_s29 }
  0xc7   : > { %s442_s13 = scalar_lea.sflag [#allocation6], %s441_s25 }
  0xc8   : > { %2059 = dma.done.wait (%p2704_p8), %s442_s13, 256  }
  0xc9   : > { %2061 = vsyncadd (%p2704_p8), %s442_s13, 4294967040  ;;  %s454_s30 = scalar_lea.vmem [#allocation7], %s2424_s29  ;;  %p2705_p11 = scmp.eq.s32.totalorder %s2185_s21, 0 }
  0xcb   : > { %2063 = dma.done.wait (%p2705_p11), [#allocation9], 512   ;;  %p2706_p12 = pmov %p2705_p11 }
  0xcc   : > { %p2707_p1 = pmov %p2705_p11 }
  0xcd   : > { %2065 = vsyncadd (%p2706_p12), [#allocation9], 4294966784 }
  0xce   : > { %2067 = dma.done.wait (%p2707_p1), [#allocation12], 16   ;;  %p2708_p6 = pmov %p2707_p1 }
  0xcf   : > { %v2098_v0 = vmov 0.0   ;;  %vm2099_vm0 = vmmov 0   ;;  %v1814_v1 = vld [vmem:[%s2641_s5] sm:$0xff]   ;;  %v1815_v2 = vld [vmem:[%s2641_s5 + $0x8] sm:$0xff]   ;;  %v1816_v3 = vld [vmem:[#allocation8] sm:$0xff]   ;;  %vm545_vm1 = vcmask 261120  }
  0xd0   : > { %2069 = vsyncadd (%p2708_p6), [#allocation12], 4294967280  ;;  %1619 = vmatprep.subr.bf16.mxu1 %v2098_v0  ;;  %1611 = vmatprep.subr.bf16.mxu0 %v2098_v0  ;;  %v518_v4 = vld [vmem:[%s445_s27] sm:$0xff]  ;;  %v516_v6 = vld [vmem:[%s436_s14] sm:$0xff]  ;;  %s2709_s15 = sld [smem:[#allocation27_spill]]  ;;  %vm725_vm2 = vcmask 64512  }
  0xd1   : > { %1623 = vmatprep.mubr.msk.bf16.mxu1 %vm2099_vm0, %v2098_v0  ;;  %1615 = vmatprep.mubr.msk.bf16.mxu0 %vm2099_vm0, %v2098_v0  ;;  %v1817_v5 = vld [vmem:[#allocation8 + $0x8] sm:$0xff]   ;;  %v519_v7 = vpack.c.bf16 %v518_v4, %v518_v4  ;;  %v517_v8 = vpack.c.bf16 %v516_v6, %v516_v6  ;;  %v1550_v9 = vld [vmem:[%s2642_s6] ss:$0 sm:$0xff]  ;;  %s2100_s26 = smov 120   ;;  %s2101_s11 = smov 112   ;;  %v1819_v25 = vld [vmem:[#allocation10 + $0x8] sm:$0xff]  }
  0xd2   : > { %1620 = vmatpush3.bf16.msra.mxu1 %v1814_v1  ;;  %1612 = vmatpush3.bf16.msra.mxu0 %v1816_v3  ;;  %v1818_v24 = vld [vmem:[#allocation10] sm:$0xff]   ;;  %v1554_v42 = vld [vmem:[#allocation11] ss:$0 sm:$0xff]  ;;  %vm787_vm3 = vcmask 1043456   ;;  %s2710_s1 = sld [smem:[#allocation28_spill]]  ;;  %s2102_s9 = smov 104  }
  0xd3   : > { %1621 = vmatprep.subr.bf16.mxu1 %v2098_v0  ;;  %1613 = vmatprep.subr.bf16.mxu0 %v2098_v0  ;;  %v520_v26 = vld [vmem:[%s454_s30] sm:$0xff]  ;;  %s2711_s22 = sld [smem:[#allocation29_spill]]  ;;  %s2712_s17 = sld [smem:[#allocation24_spill]] }
  0xd4   : > { %v521_v27 = vpack.c.bf16 %v520_v26, %v520_v26  ;;  %s1575_s4 = sshll.u32 %s2185_s21, 7  ;;  %s514_s20 = scalar_lea.vmem [#allocation13], %s2424_s29 }
  0xd5   : > { %s1384_s10 = sshll.u32 %s514_s20, 4  ;;  %s1371_s21 = scalar_lea.sflag [#allocation4], %s2421_s16  ;;  %s2593_s10 = int_to_ptr.vmem [resolvable:$true] %s1384_s10 }
  0xd6   : > { %1622 = vmatpush3.bf16.msra.mxu1 %v1815_v2  ;;  %1614 = vmatpush3.bf16.msra.mxu0 %v1817_v5  ;;  %v1546_v11 = vld [vmem:[%s2709_s15] ss:$0 sm:$0xff]  ;;  %s2010_s29 = scalar_lea.vmem %s2593_s10, 128  ;;  %s2103_s28 = smov [#allocation13]  }
  0xd7   : > { %1635 = vmatprep.subr.bf16.mxu1 %v2098_v0  ;;  %1627 = vmatprep.subr.bf16.mxu0 %v2098_v0  ;;  %p2011_p10 = scmp.ne.s32.totalorder %s2593_s10, %s2010_s29 }
  0xd8   : > { %v832_v56 = vld [vmem:[%s2710_s1] sm:$0xf] }
  0xd9   : > { %1624 = vmatmul.mubr.msk.bf16.vlgmr.msra.gmra.mrb[0].mxu1 %vm545_vm1, %v519_v7  ;;  %1616 = vmatmul.mubr.msk.bf16.vlgmr.msra.gmra.mrb[0].mxu0 %vm545_vm1, %v517_v8  ;;  %v837_v57 = vsel %vm787_vm3, %v832_v56, 0  ;;  %p2714_p0 = scmp.ne.s32.totalorder %s2712_s17, 0 }
  0xda   : > { %1637 = vmatprep.mubr.msk.bf16.mxu1 %vm2099_vm0, %v2098_v0  ;;  %1631 = vmatprep.mubr.msk.bf16.mxu0 %vm2099_vm0, %v2098_v0 }
  0xdb   : > { %1628 = vmatpush3.bf16.msra.mxu0 %v1818_v24  ;;  %p2012_p4 = pnand %p2011_p10, %p2714_p0 }
  0xdc   : > { %1629 = vmatprep.subr.bf16.mxu0 %v2098_v0 }
  0xdd   : > { %p2013_p9 = pneg %p2012_p4 }
  0xdf   : > { %1630 = vmatpush3.bf16.msra.mxu0 %v1819_v25 }
  0xe0   : > { %1641 = vmatprep.subr.bf16.mxu0 %v2098_v0 }
  0xe2   : > { %1632 = vmatmul.mubr.msk.bf16.vlgmr.msra.gmra.mrb[4].mxu0 %vm545_vm1, %v521_v27 }
  0xe3   : > { %1643 = vmatprep.mubr.msk.bf16.mxu0 %vm2099_vm0, %v2098_v0 }
 0x1ac   : > { %v649_v10 = vpop.f32.mrb[0].mxu1  ;;  %v583_v15 = vpop.f32.mrb[0].mxu0 }
 0x1ad   : > { %v650_v12 = vadd.f32 %v1550_v9, %v649_v10  ;;  %v1625_v13 = vpop.f32.mrb[1].mxu1  ;;  %v584_v18 = vadd.f32 %v1546_v11, %v583_v15  ;;  %v1617_v19 = vpop.f32.mrb[1].mxu0 }
 0x1ae   : > { %v652_v14 = vpop.f32.mrb[2].mxu1  ;;  %v586_v20 = vpop.f32.mrb[2].mxu0 }
 0x1af   : > { %v2475_v16 = vpack.c.bf16 %v650_v12, %v650_v12  ;;  %v1626_v17 = vpop.f32.mrb[3].mxu1  ;;  %v2479_v21 = vpack.c.bf16 %v584_v18, %v584_v18  ;;  %v1618_v23 = vpop.f32.mrb[3].mxu0 }
 0x1b1   : > { %890 = vrot.lane.b32.xlu1 %v2475_v16, %s2100_s26  ;;  %v730_v22 = vsel %vm725_vm2, %v2475_v16, 0 }
 0x1b2   : > { %1636 = vmatpush3.bf16.xpose.msra.mxu1 %v730_v22 }
 0x1b3   : > { %1647 = vmatprep.subr.bf16.mxu1 %v2098_v0 }
 0x1b5   : > { %887 = vrot.lane.b32.xlu1 %v2479_v21, %s2100_s26  ;;  %v715_v33 = vpop.f32.mrb[4].mxu0 }
 0x1b6   : > { %v1633_v34 = vpop.f32.mrb[5].mxu0  ;;  %v716_v43 = vadd.f32 %v1554_v42, %v715_v33 }
 0x1b7   : > { %v718_v35 = vpop.f32.mrb[6].mxu0 }
 0x1b8   : > { %v1634_v36 = vpop.f32.mrb[7].mxu0  ;;  %v2501_v44 = vpack.c.bf16 %v716_v43, %v716_v43  ;;  %v1564_v35 = vld [vmem:[%s2710_s1 + $0x4] sm:$0xf] }
 0x1b9   : > { %1638 = vmatmul.mubr.msk.bf16.vlgmr.msra.gmra.mrb[4].mxu1 %vm725_vm2, %v2479_v21  ;;  %1049 = vrot.lane.b32.xlu1 %v2479_v21, %s2101_s11  ;;  %v1006_v36 = vsel %vm787_vm3, %v1564_v35, 0 }
 0x1ba   : > { %1649 = vmatprep.mubr.msk.bf16.mxu1 %vm2099_vm0, %v2098_v0  ;;  %v789_v45 = vsel %vm787_vm3, %v2501_v44, 0  ;;  %1648 = vmatpush3.bf16.msra.mxu1 %v837_v57 }
 0x1bb   : > { %1642 = vmatpush3.bf16.msra.mxu0 %v789_v45  ;;  %1659 = vmatprep.subr.bf16.mxu1 %v2098_v0 }
 0x1bc   : > { %1653 = vmatprep.subr.bf16.mxu0 %v2098_v0 }
 0x223   : > { %v891_v49 = vpop.permute.xlu1 %890 }
 0x224   : > { %v896_v51 = vsel %vm725_vm2, %v891_v49, 0 }
 0x227   : > { %v888_v53 = vpop.permute.xlu1 %887 }
 0x22b   : > { %v1050_v55 = vpop.permute.xlu1 %1049 }
 0x28c   : > { %v766_v28 = vpop.f32.mrb[4].mxu1 }
 0x28d   : > { %v1639_v29 = vpop.f32.mrb[5].mxu1  ;;  %v772_v30 = vsel %vm725_vm2, %v766_v28, -inf }
 0x28e   : > { %773 = vmax.xlane.f32.xlu0 %v772_v30  ;;  %v769_v31 = vpop.f32.mrb[6].mxu1 }
 0x28f   : > { %v1640_v32 = vpop.f32.mrb[7].mxu1 }
 0x31b   : > { %v774_v37 = vpop.xlane.xlu0 %773 }
 0x31c   : > { %v775_v38 = vsub.f32 %v766_v28, %v774_v37 }
 0x31e   : > { %v776_v39 = vmul.f32 1.442695, %v775_v38 }
 0x320   : > { %1820 = vpow2.f32 %v776_v39 }
 0x32a   : > { %v1821_v40 = vpop.eup %1820 }
 0x32b   : > { %v778_v41 = vsel %vm725_vm2, %v1821_v40, 0.0 }
 0x32c   : > { %779 = vadd.xlane.f32.xlu0 %v778_v41 }
 0x342   : > { %1051 = vrot.lane.b32.xlu0 %v2475_v16, %s2101_s11 }
 0x3b9   : > { %v780_v46 = vpop.xlane.xlu0 %779 }
 0x3ba   : > { %1822 = vrcp.f32 %v780_v46 }
 0x3bd   : > { %v1052_v52 = vpop.permute.xlu0 %1051 }
 0x3be   : > { %v1057_v54 = vsel %vm725_vm2, %v1052_v52, 0 }
 0x3c4   : > { %v1823_v47 = vpop.eup %1822 }
 0x3c5   : > { %v782_v48 = vmul.f32 %v1823_v47, %v1821_v40  ;;  %v1568_v47 = vld [vmem:[%s2710_s1 + $0x8] sm:$0xf] }
 0x3c7   : > { %v783_v50 = vpack.c.bf16 %v782_v48, %v782_v48 }
 0x3c9   : > { %1644 = vmatmul.mubr.msk.bf16.vlgmr.msra.gmra.mrb[8].mxu0 %vm725_vm2, %v783_v50 }
 0x3ca   : > { %1654 = vmatpush3.bf16.xpose.msra.mxu0 %v896_v51  ;;  %1655 = vmatprep.mubr.msk.bf16.mxu0 %vm2099_vm0, %v2098_v0  ;;  %v1166_v51 = vsel %vm787_vm3, %v1568_v47, 0 }
 0x3cb   : > { %1671 = vmatprep.subr.bf16.mxu0 %v2098_v0 }
 0x3d1   : > { %1656 = vmatmul.mubr.msk.bf16.vlgmr.msra.gmra.mrb[12].mxu0 %vm725_vm2, %v888_v53 }
 0x3d2   : > { %1672 = vmatpush3.bf16.xpose.msra.mxu0 %v1057_v54  ;;  %1673 = vmatprep.mubr.msk.bf16.mxu0 %vm2099_vm0, %v2098_v0 }
 0x3d3   : > { %1677 = vmatprep.subr.bf16.mxu0 %v2098_v0 }
 0x3d9   : > { %1674 = vmatmul.mubr.msk.bf16.vlgmr.msra.gmra.mrb[16].mxu0 %vm725_vm2, %v1050_v55 }
 0x3da   : > { %1679 = vmatprep.mubr.msk.bf16.mxu0 %vm2099_vm0, %v2098_v0 }
 0x49c   : > { %v825_v58 = vpop.f32.mrb[8].mxu0 }
 0x49d   : > { %v831_v59 = vpack.c.bf16 %v825_v58, %v825_v58  ;;  %v1645_v60 = vpop.f32.mrb[9].mxu0 }
 0x49e   : > { %v828_v61 = vpop.f32.mrb[10].mxu0 }
 0x49f   : > { %v1646_v62 = vpop.f32.mrb[11].mxu0  ;;  %1650 = vmatmul.mubr.msk.bf16.vlgmr.msra.gmra.mrb[8].mxu1 %vm725_vm2, %v831_v59 }
 0x4a0   : > { %1661 = vmatprep.mubr.msk.bf16.mxu1 %vm2099_vm0, %v2098_v0 }
 0x4a4   : > { %v932_v63 = vpop.f32.mrb[12].mxu0 }
 0x4a5   : > { %v1657_v1 = vpop.f32.mrb[13].mxu0  ;;  %v938_v9 = vsel %vm725_vm2, %v932_v63, -inf }
 0x4a6   : > { %v935_v2 = vpop.f32.mrb[14].mxu0  ;;  %v1572_v1 = vld [vmem:[%s2710_s1 + $0xc] sm:$0xf] }
 0x4a7   : > { %v1658_v3 = vpop.f32.mrb[15].mxu0 }
 0x4ac   : > { %v1093_v4 = vpop.f32.mrb[16].mxu0 }
 0x4ad   : > { %v1675_v5 = vpop.f32.mrb[17].mxu0  ;;  %v1099_v6 = vsel %vm725_vm2, %v1093_v4, -inf }
 0x4ae   : > { %1100 = vmax.xlane.f32.xlu1 %v1099_v6  ;;  %v1096_v7 = vpop.f32.mrb[18].mxu0 }
 0x4af   : > { %v1676_v8 = vpop.f32.mrb[19].mxu0 }
 0x4bf   : > { %1111 = vrot.lane.b32.xlu1 %v2501_v44, %s2101_s11  ;;  %s2713_s11 = sld [smem:[#allocation30_spill]] }
 0x4c3   : > { %1209 = vrot.lane.b32.xlu1 %v2479_v21, %s2102_s9 }
 0x4c5   : > { %s2591_s3 = scalar_lea.hbm %s2713_s11, %s1575_s4 }
 0x4e7   : > { %939 = vmax.xlane.f32.xlu1 %v938_v9  ;;  %v1561_v9 = vld [vmem:[%s2711_s22] ss:$0 sm:$0xff] }
 0x4f8   : > { %951 = vrot.lane.b32.xlu1 %v2501_v44, %s2100_s26 }
 0x53b   : > { %v1101_v10 = vpop.xlane.xlu1 %1100 }
 0x53c   : > { %v1102_v11 = vsub.f32 %v1093_v4, %v1101_v10  ;;  %v1326_v4 = vsel %vm787_vm3, %v1572_v1, 0 }
 0x53e   : > { %v1103_v12 = vmul.f32 1.442695, %v1102_v11 }
 0x53f   : > { %v1112_v13 = vpop.permute.xlu1 %1111 }
 0x540   : > { %1824 = vpow2.f32 %v1103_v12  ;;  %v1117_v14 = vsel %vm787_vm3, %v1112_v13, 0 }
 0x541   : > { %1678 = vmatpush3.bf16.msra.mxu0 %v1117_v14 }
 0x542   : > { %1689 = vmatprep.subr.bf16.mxu0 %v2098_v0 }
 0x543   : > { %v1210_v18 = vpop.permute.xlu1 %1209 }
 0x54a   : > { %v1825_v15 = vpop.eup %1824 }
 0x54b   : > { %v1105_v17 = vsel %vm725_vm2, %v1825_v15, 0.0 }
 0x54c   : > { %1106 = vadd.xlane.f32.xlu0 %v1105_v17 }
 0x562   : > { %1211 = vrot.lane.b32.xlu0 %v2475_v16, %s2102_s9 }
 0x574   : > { %v940_v19 = vpop.xlane.xlu1 %939 }
 0x575   : > { %v941_v20 = vsub.f32 %v932_v63, %v940_v19 }
 0x577   : > { %v942_v21 = vmul.f32 1.442695, %v941_v20 }
 0x578   : > { %v952_v22 = vpop.permute.xlu1 %951 }
 0x579   : > { %1826 = vpow2.f32 %v942_v21  ;;  %v957_v23 = vsel %vm787_vm3, %v952_v22, 0 }
 0x57a   : > { %1660 = vmatpush3.bf16.msra.mxu1 %v957_v23 }
 0x57b   : > { %1665 = vmatprep.subr.bf16.mxu1 %v2098_v0 }
 0x583   : > { %v1827_v24 = vpop.eup %1826 }
 0x584   : > { %v944_v25 = vsel %vm725_vm2, %v1827_v24, 0.0 }
 0x585   : > { %945 = vadd.xlane.f32.xlu0 %v944_v25 }
 0x5d9   : > { %v1107_v26 = vpop.xlane.xlu0 %1106 }
 0x5da   : > { %1828 = vrcp.f32 %v1107_v26 }
 0x5dd   : > { %v1212_v16 = vpop.permute.xlu0 %1211 }
 0x5de   : > { %v1217_v30 = vsel %vm725_vm2, %v1212_v16, 0 }
 0x5e4   : > { %v1829_v27 = vpop.eup %1828 }
 0x5e5   : > { %v1109_v28 = vmul.f32 %v1829_v27, %v1825_v15 }
 0x5e7   : > { %v1110_v29 = vpack.c.bf16 %v1109_v28, %v1109_v28 }
 0x5e9   : > { %1680 = vmatmul.mubr.msk.bf16.vlgmr.msra.gmra.mrb[20].mxu0 %vm725_vm2, %v1110_v29 }
 0x5ea   : > { %1690 = vmatpush3.bf16.xpose.msra.mxu0 %v1217_v30  ;;  %1691 = vmatprep.mubr.msk.bf16.mxu0 %vm2099_vm0, %v2098_v0 }
 0x5f1   : > { %1692 = vmatmul.mubr.msk.bf16.vlgmr.msra.gmra.mrb[24].mxu0 %vm725_vm2, %v1210_v18 }
 0x612   : > { %v946_v31 = vpop.xlane.xlu0 %945 }
 0x613   : > { %1830 = vrcp.f32 %v946_v31 }
 0x61d   : > { %v1831_v32 = vpop.eup %1830 }
 0x61e   : > { %v948_v33 = vmul.f32 %v1831_v32, %v1827_v24 }
 0x620   : > { %v949_v34 = vpack.c.bf16 %v948_v33, %v948_v33 }
 0x622   : > { %1662 = vmatmul.mubr.msk.bf16.vlgmr.msra.gmra.mrb[12].mxu1 %vm725_vm2, %v949_v34 }
 0x623   : > { %1667 = vmatprep.mubr.msk.bf16.mxu1 %vm2099_vm0, %v2098_v0  ;;  %1666 = vmatpush3.bf16.msra.mxu1 %v1006_v36 }
 0x624   : > { %1683 = vmatprep.subr.bf16.mxu1 %v2098_v0 }
 0x6bc   : > { %v1153_v37 = vpop.f32.mrb[20].mxu0 }
 0x6bd   : > { %v1681_v38 = vpop.f32.mrb[21].mxu0  ;;  %v1159_v54 = vpack.c.bf16 %v1153_v37, %v1153_v37 }
 0x6be   : > { %v1156_v39 = vpop.f32.mrb[22].mxu0 }
 0x6bf   : > { %v1682_v40 = vpop.f32.mrb[23].mxu0 }
 0x6c4   : > { %v1253_v41 = vpop.f32.mrb[24].mxu0 }
 0x6c5   : > { %v1693_v42 = vpop.f32.mrb[25].mxu0  ;;  %v1259_v43 = vsel %vm725_vm2, %v1253_v41, -inf }
 0x6c6   : > { %1260 = vmax.xlane.f32.xlu0 %v1259_v43  ;;  %v1256_v45 = vpop.f32.mrb[26].mxu0 }
 0x6c7   : > { %v1694_v46 = vpop.f32.mrb[27].mxu0 }
 0x6f5   : > { %v993_v48 = vpop.f32.mrb[12].mxu1 }
 0x6f6   : > { %v999_v49 = vpack.c.bf16 %v993_v48, %v993_v48  ;;  %v1663_v50 = vpop.f32.mrb[13].mxu1 }
 0x6f7   : > { %v996_v52 = vpop.f32.mrb[14].mxu1 }
 0x6f8   : > { %v1664_v53 = vpop.f32.mrb[15].mxu1  ;;  %1668 = vmatmul.mubr.msk.bf16.vlgmr.msra.gmra.mrb[8].mxu1 %vm725_vm2, %v999_v49 }
 0x6f9   : > { %1684 = vmatpush3.bf16.msra.mxu1 %v1166_v51  ;;  %1685 = vmatprep.mubr.msk.bf16.mxu1 %vm2099_vm0, %v2098_v0 }
 0x6fa   : > { %1695 = vmatprep.subr.bf16.mxu1 %v2098_v0 }
 0x704   : > { %1686 = vmatmul.mubr.msk.bf16.vlgmr.msra.gmra.mrb[8].mxu1 %vm725_vm2, %v1159_v54 }
 0x705   : > { %1697 = vmatprep.mubr.msk.bf16.mxu1 %vm2099_vm0, %v2098_v0 }
 0x753   : > { %v1261_v55 = vpop.xlane.xlu0 %1260 }
 0x754   : > { %v1262_v56 = vsub.f32 %v1253_v41, %v1261_v55 }
 0x756   : > { %v1263_v57 = vmul.f32 1.442695, %v1262_v56 }
 0x758   : > { %1832 = vpow2.f32 %v1263_v57 }
 0x762   : > { %v1833_v58 = vpop.eup %1832 }
 0x763   : > { %v1265_v59 = vsel %vm725_vm2, %v1833_v58, 0.0 }
 0x764   : > { %1266 = vadd.xlane.f32.xlu0 %v1265_v59 }
 0x77a   : > { %1271 = vrot.lane.b32.xlu0 %v2501_v44, %s2102_s9  ;;  %s2014_s9 = sshll.u32 %s2103_s28, 4  ;;  %s2015_s9 = int_to_ptr.vmem [resolvable:$false] %s2014_s9 }
 0x77b   : > { %s2016_s14 = scalar_lea.vmem %s2015_s9, 256  ;;  %p2017_p13 = scmp.lt.s32.totalorder %s2593_s10, %s2015_s9 }
 0x77c   : > { %p2018_p7 = scmp.lt.s32.totalorder %s2016_s14, %s2010_s29 }
 0x77e   : > { %p2019_p3 = por %p2018_p7, %p2017_p13 }
 0x780   : > { %p2020_p5 = pnand %p2019_p3, %p2013_p9 }
 0x7f1   : > { %v1267_v60 = vpop.xlane.xlu0 %1266 }
 0x7f2   : > { %1834 = vrcp.f32 %v1267_v60 }
 0x7f5   : > { %v1272_v61 = vpop.permute.xlu0 %1271 }
 0x7f6   : > { %v1277_v62 = vsel %vm787_vm3, %v1272_v61, 0 }
 0x7f7   : > { %1696 = vmatpush3.bf16.msra.mxu1 %v1277_v62 }
 0x7f8   : > { %1701 = vmatprep.subr.bf16.mxu1 %v2098_v0 }
 0x7fc   : > { %v1835_v63 = vpop.eup %1834 }
 0x7fd   : > { %v1269_v2 = vmul.f32 %v1835_v63, %v1833_v58 }
 0x7ff   : > { %v1270_v3 = vpack.c.bf16 %v1269_v2, %v1269_v2 }
 0x801   : > { %1698 = vmatmul.mubr.msk.bf16.vlgmr.msra.gmra.mrb[16].mxu1 %vm725_vm2, %v1270_v3 }
 0x802   : > { %1702 = vmatpush3.bf16.msra.mxu1 %v1326_v4  ;;  %1703 = vmatprep.mubr.msk.bf16.mxu1 %vm2099_vm0, %v2098_v0 }
 0x8d4   : > { %v1313_v44 = vpop.f32.mrb[16].mxu1 }
 0x8d5   : > { %v1319_v5 = vpack.c.bf16 %v1313_v44, %v1313_v44  ;;  %v1699_v6 = vpop.f32.mrb[17].mxu1 }
 0x8d6   : > { %v1316_v7 = vpop.f32.mrb[18].mxu1 }
 0x8d7   : > { %v1700_v8 = vpop.f32.mrb[19].mxu1  ;;  %1704 = vmatmul.mubr.msk.bf16.vlgmr.msra.gmra.mrb[8].mxu1 %vm725_vm2, %v1319_v5 }
 0x9aa   : > { %v1362_v10 = vpop.f32.mrb[8].mxu1 }
 0x9ab   : > { %v1707_v11 = vadd.f32 %v1561_v9, %v1362_v10  ;;  %v1705_v12 = vpop.f32.mrb[9].mxu1 }
 0x9ac   : > { %v1365_v0 = vpop.f32.mrb[10].mxu1 }
 0x9ad   : > { %v1706_v13 = vpop.f32.mrb[11].mxu1  ;;  %1369 = vst.msk [vmem:[%s514_s20] sm:$0xff] %vm545_vm1, %v1707_v11 }
 0x9ae   : > { %2023 = shalt.err (!%p2020_p5)
}
 0x9af   : > { %s2024_s16 = scalar_lea.hbm %s2591_s3, 128  ;;  %s2028_s27 = scalar_lea.hbm %s2713_s11, 256 }
 0x9b0   : > { %p2025_p2 = scmp.ne.s32.totalorder %s2591_s3, %s2024_s16  ;;  %p2029_p12 = scmp.lt.u32.totalorder %s2591_s3, %s2713_s11 }
 0x9b1   : > { %p2030_p1 = scmp.lt.u32.totalorder %s2028_s27, %s2024_s16  ;;  %p2032_p10 = scmp.lt.u32.totalorder %s2024_s16, %s2591_s3 }
 0x9b2   : > { %p2026_p8 = pnand %p2025_p2, %p2714_p0 }
 0x9b3   : > { %p2031_p6 = por %p2030_p1, %p2029_p12 }
 0x9b4   : > { %p2027_p11 = pneg %p2026_p8 }
 0x9b5   : > { %p2033_p4 = por %p2032_p10, %p2031_p6 }
 0x9b7   : > { %p2034_p9 = pnand %p2033_p4, %p2027_p11 }
 0x9b9   : > { %2037 = shalt.err (!%p2034_p9)
}
 0x9ba   : > { %1738 = dma.vmem_to_hbm [thread:$0]  (%p2714_p0), %s2593_s10, 128, %s2591_s3, %s1371_s21  }
 0x9bb PF: > { %s2715_s12 = sld [smem:[#allocation19_spill]]  ;;  %s2716_s24 = sld [smem:[#allocation21_spill]] }
 0x9bc   : > { %s2717_s22 = sld [smem:[#allocation20_spill]] }
 0x9c1   : > { %s1396_s4 = sand.u32 1, %s2715_s12   ;;  %p2718_p13 = scmp.ne.s32.totalorder %s2716_s24, 0 }
 0x9c2   : > { %p2719_p7 = scmp.ge.s32.totalorder %s2717_s22, 2  ;;  %s1397_s20 = scalar_lea.sflag [#allocation4], %s1396_s4 }
 0x9c4   : > { %p1761_p3 = pnand %p2719_p7, %p2718_p13 }
 0x9c6   : > { %2071 = dma.done.wait (!%p1761_p3), %s1397_s20, 128  }
 0x9c7   : > { %2073 = vsyncadd (!%p1761_p3), %s1397_s20, 4294967168  ;;  %s2720_s20 = sld [smem:[#allocation22_spill]]  ;;  %s2721_s15 = sld [smem:[#allocation23_spill]] }
 0x9c8   : > { %s2722_s17 = smov %s2080_s18  ;;  %s2723_s18 = smov %s2084_s19 }
 0x9cd   : > { %p29_p5 = scmp.ge.s32.totalorder %s2720_s20, 4   ;;  %s2724_s19 = smov %s2721_s15 }
 0x9cf   :  { %31 = sbr.rel (!%p29_p5) target bundleno = 16 (0x10), region = 148 }
 0x9d6   :  { %1402 = vsyncpa [#allocation3], 1 }
 0x9d7   :  { %1404 = vsyncpa [#allocation3 + $0x1], 1 }
 0x9d8   :  { %1405 = vsyncpa [#allocation6], 1 }
 0x9d9   :  { %1407 = vsyncpa [#allocation6 + $0x1], 1 }
 0x9da   :  { %1408 = vsyncpa [#allocation9], 1 }
 0x9db   :  { %1409 = vsyncpa [#allocation12], 1 }
 0x9dc   :  { %1410 = vsyncpa [#allocation4], 1 }
 0x9dd   :  { %1412 = vsyncpa [#allocation4 + $0x1], 1 }

// kernel: tpu_custom_call.1
= control target key start
LH: loop header
LB: loop body
LE: loop exit
PB: predicated region body
PF: predicated region fallthrough
CT: control target
= control target key end

     0   :  { %s2636_s0 = inlined_call_operand.hbm [shape: f32[2,8,32], index: 0, kind: input, shape index: {}]   ;;  %s2637_s1 = inlined_call_operand.hbm [shape: f32[2,8,32], index: 1, kind: input, shape index: {}]   ;;  %s2638_s2 = inlined_call_operand.hbm [shape: f32[2,8,32], index: 2, kind: input, shape index: {}]   ;;  %s2639_s3 = inlined_call_operand.hbm [shape: bf16[32,32], index: 3, kind: input, shape index: {}]   ;;  %s2640_s4 = inlined_call_operand.vmem [shape: f32[1,32], index: 4, kind: input, shape index: {}]   ;;  %s2641_s5 = inlined_call_operand.vmem [shape: bf16[32,32], index: 5, kind: input, shape index: {}]   ;;  %s2642_s6 = inlined_call_operand.vmem [shape: f32[1,32], index: 6, kind: input, shape index: {}]   ;;  %s2643_s7 = inlined_call_operand.hbm [shape: bf16[32,32], index: 7, kind: input, shape index: {}]   ;;  %s2644_s8 = inlined_call_operand.hbm [shape: f32[1,32], index: 8, kind: input, shape index: {}]   ;;  %s2645_s9 = inlined_call_operand.vmem [shape: bf16[4,8,32], index: 9, kind: input, shape index: {}]   ;;  %s2646_s10 = inlined_call_operand.vmem [shape: f32[1,32], index: 10, kind: input, shape index: {}]   ;;  %s2647_s11 = inlined_call_operand.hbm [shape: f32[2,8,32], index: 11, kind: output, shape index: {}]  }
   0x1   :  { %2672 = sst [smem:[#allocation25_spill]] %s2637_s1 }
   0x2   :  { %2673 = sst [smem:[#allocation26_spill]] %s2639_s3 }
   0x3   :  { %2674 = sst [smem:[#allocation27_spill]] %s2640_s4 }
   0x4   :  { %2675 = sst [smem:[#allocation28_spill]] %s2645_s9 }
   0x5   :  { %2676 = sst [smem:[#allocation29_spill]] %s2646_s10 }
   0x6   :  { %2677 = sst [smem:[#allocation30_spill]] %s2647_s11 }
   0x7   :  { %16 = vsyncpa [#allocation3], 0 }
   0x8   :  { %18 = vsyncpa [#allocation3 + $0x1], 0 }
   0x9   :  { %19 = vsyncpa [#allocation6], 0 }
   0xa   :  { %21 = vsyncpa [#allocation6 + $0x1], 0 }
   0xb   :  { %22 = vsyncpa [#allocation9], 0 }
   0xc   :  { %23 = vsyncpa [#allocation12], 0 }
   0xd   :  { %24 = vsyncpa [#allocation4], 0 }
   0xe   :  { %26 = vsyncpa [#allocation4 + $0x1], 0  ;;  %s2164_s17 = smov 0   ;;  %s2166_s18 = smov 0  }
   0xf   :  { %s2168_s19 = smov 0   ;;  %s2170_s20 = smov 0  }
  0x10 LB: > { %2678 = sst [smem:[#allocation19_spill]] %s2076_s17  ;;  %s2185_s21 = sadd.s32 4294967295, %s2088_s20   ;;  %s2088_s20 = sphi %s2170_s20, %s2720_s20   ;;  %s2084_s19 = sphi %s2168_s19, %s2724_s19   ;;  %s2080_s18 = sphi %s2166_s18, %s2723_s18   ;;  %s2076_s17 = sphi %s2164_s17, %s2722_s17  }
  0x11   : > { %2679 = sst [smem:[#allocation20_spill]] %s2088_s20  ;;  %s1526_s22 = sadd.s32 4294967294, %s2088_s20  }
  0x12   : > { %p52_p0 = scmp.ne.s32.totalorder %s2080_s18, %s2076_s17  ;;  %p2650_p1 = scmp.eq.s32.totalorder %s2185_s21, 0 }
  0x13   : > { %p302_p3 = scmp.eq.s32.totalorder %s1526_s22, 1  ;;  %p1527_p5 = scmp.ge.s32.totalorder %s2088_s20, 1 }
  0x14   : > { %p2194_p4 = por %p2650_p1, %p52_p0  ;;  %p309_p7 = scmp.lt.s32.totalorder %s2088_s20, 3 }
  0x15   : > { %p2199_p6 = por %p302_p3, %p52_p0  ;;  %s2090_s26 = smov [#allocation8]  }
  0x16   : > { %s2680_s23 = scalar_select %p2194_p4, 1, 0 }
  0x17   : > { %s2681_s24 = scalar_select %p2199_p6, 1, 0 }
  0x18   : > { %p2204_p8 = pnand %p1527_p5, %p309_p7  ;;  %s321_s27 = sshll.u32 %s2090_s26, 4  ;;  %s2208_s27 = int_to_ptr.vmem [resolvable:$true] %s321_s27 }
  0x19   : > { %2682 = sst [smem:[#allocation21_spill]] %s2681_s24  ;;  %s2220_s29 = sadd.s32 1, %s2088_s20  }
  0x1a   : > { %s2683_s25 = scalar_select %p2204_p8, 1, 0 }
  0x1b   : > { %p1740_p9 = pneg %p2204_p8  ;;  %2685 = sst [smem:[#allocation22_spill]] %s2220_s29 }
  0x1c   : > { %s39_s30 = sadd.s32 1, %s2084_s19  ;;  %s36_s12 = ssub.s32 %s2088_s20, %s2220_s29 }
  0x1d   : > { %p2215_p11 = pnand %p1740_p9, %p2650_p1  ;;  %s2686_s3 = sld [smem:[#allocation26_spill]] }
  0x1f   : > { %s2684_s28 = scalar_select %p2215_p11, 1, 0 }
  0x20   : > { %p2233_p13 = pneg %p2215_p11 }
  0x22   : > { %s2687_s26 = scalar_select %p2233_p13, 1, 0 }
  0x23   : > { %s1836_s15 = scalar_lea.hbm %s2686_s3, 256 }
  0x24   : > { %p1837_p12 = scmp.ne.s32.totalorder %s2686_s3, %s1836_s15  ;;  %p1843_p5 = scmp.lt.u32.totalorder %s1836_s15, %s2686_s3 }
  0x26   : > { %p1839_p0 = pnand %p2233_p13, %p1837_p12 }
  0x28   : > { %p1840_p3 = pneg %p1839_p0 }
  0x2a   : > { %p1845_p7 = pnand %p1843_p5, %p1840_p3 }
  0x2c   : > { %1848 = shalt.err (!%p1845_p7)
}
  0x2d   : > { %s1849_s13 = scalar_lea.vmem %s2208_s27, 256  ;;  %p1857_p2 = scmp.lt.s32.totalorder %s2208_s27, %s2208_s27 }
  0x2e   : > { %p1850_p9 = scmp.ne.s32.totalorder %s2208_s27, %s1849_s13  ;;  %p1858_p6 = scmp.lt.s32.totalorder %s1849_s13, %s1849_s13 }
  0x30   : > { %p1852_p10 = pnand %p1850_p9, %p2233_p13  ;;  %p1859_p12 = por %p1858_p6, %p1857_p2 }
  0x32   : > { %p1853_p1 = pneg %p1852_p10 }
  0x34   : > { %p1860_p0 = pnand %p1859_p12, %p1853_p1 }
  0x36   : > { %1863 = shalt.err (!%p1860_p0)
}
  0x37   : > { %s2654_s14 = smov 64   ;;  %s2655_s17 = smov 4  }
  0x38   : > { %1743 = dma.hbm_to_vmem [thread:$0]  (!%p2215_p11), %s2686_s3, 256, %s2208_s27, [#allocation9], %s2654_s14, %s2654_s14, %s2655_s17  }
  0x39   : > { %p37_p1 = scmp.eq.s32.totalorder %s36_s12, 0  ;;  %p46_p2 = scmp.ne.s32.totalorder %s2084_s19, %s2080_s18 }
  0x3a   : > { %p47_p6 = scmp.eq.s32.totalorder %s2088_s20, 0  ;;  %p1767_p10 = scmp.lt.s32.totalorder %s2088_s20, 2 }
  0x3b   : > { %s2262_s16 = scalar_select %p37_p1, %s2084_s19, %s39_s30  }
  0x3c   : > { %p48_p3 = por %p47_p6, %p46_p2  ;;  %p2689_p5 = scmp.eq.s32.totalorder %s2185_s21, 1 }
  0x3d   : > { %2688 = sst [smem:[#allocation23_spill]] %s2262_s16  ;;  %s2656_s13 = sand.u32 1, %s2084_s19  }
  0x3e   : > { %p2266_p7 = por %p2689_p5, %p46_p2  ;;  %s2272_s29 = sshll.u32 %s2088_s20, 7 }
  0x3f   : > { %s2276_s11 = sshll.u32 %s2656_s13, 3  ;;  %p2278_p9 = pnand %p1767_p10, %p48_p3 }
  0x40   : > { %s2690_s22 = scalar_select %p2266_p7, 1, 0 }
  0x41   : > { %s2692_s27 = scalar_select %p2278_p9, 1, 0 }
  0x42   : > { %2691 = sst [smem:[#allocation24_spill]] %s2690_s22  ;;  %s392_s30 = sand.u32 1, %s2088_s20  }
  0x43   : > { %s2693_s1 = sld [smem:[#allocation25_spill]]  ;;  %s396_s14 = scalar_lea.vmem [#allocation5], %s2276_s11 }
  0x44   : > { %s403_s17 = sshll.u32 %s396_s14, 4  ;;  %s2292_s13 = scalar_lea.sflag [#allocation6], %s392_s30  ;;  %s2290_s17 = int_to_ptr.vmem [resolvable:$true] %s403_s17 }
  0x45   : > { %p2298_p0 = pneg %p2278_p9 }
  0x47   : > { %s2694_s16 = scalar_select %p2298_p0, 1, 0 }
  0x49   : > { %s2287_s15 = scalar_lea.hbm %s2693_s1, %s2272_s29  ;;  %s1869_s20 = scalar_lea.hbm %s2693_s1, 256 }
  0x4a   : > { %s1864_s3 = scalar_lea.hbm %s2287_s15, 128  ;;  %p1870_p6 = scmp.lt.u32.totalorder %s2287_s15, %s2693_s1 }
  0x4b   : > { %p1865_p12 = scmp.ne.s32.totalorder %s2287_s15, %s1864_s3  ;;  %p1871_p10 = scmp.lt.u32.totalorder %s1869_s20, %s1864_s3 }
  0x4c   : > { %p1873_p5 = scmp.lt.u32.totalorder %s1864_s3, %s2287_s15 }
  0x4d   : > { %p1867_p1 = pnand %p2298_p0, %p1865_p12  ;;  %p1872_p3 = por %p1871_p10, %p1870_p6 }
  0x4f   : > { %p1868_p2 = pneg %p1867_p1  ;;  %p1874_p7 = por %p1873_p5, %p1872_p3 }
  0x51   : > { %p1875_p4 = pnand %p1874_p7, %p1868_p2 }
  0x53   : > { %1878 = shalt.err (!%p1875_p4)
}
  0x54   : > { %s1879_s30 = scalar_lea.vmem %s2290_s17, 128  ;;  %s2093_s12 = smov [#allocation5]  }
  0x55   : > { %p1880_p12 = scmp.ne.s32.totalorder %s2290_s17, %s1879_s30  ;;  %s1884_s24 = sshll.u32 %s2093_s12, 4  ;;  %s1885_s24 = int_to_ptr.vmem [resolvable:$false] %s1884_s24 }
  0x56   : > { %s1886_s22 = scalar_lea.vmem %s1885_s24, 256  ;;  %p1887_p11 = scmp.lt.s32.totalorder %s2290_s17, %s1885_s24 }
  0x57   : > { %p1882_p1 = pnand %p1880_p12, %p2298_p0  ;;  %p1888_p13 = scmp.lt.s32.totalorder %s1886_s22, %s1879_s30 }
  0x59   : > { %p1883_p8 = pneg %p1882_p1  ;;  %p1889_p6 = por %p1888_p13, %p1887_p11 }
  0x5b   : > { %p1890_p10 = pnand %p1889_p6, %p1883_p8 }
  0x5d   : > { %1893 = shalt.err (!%p1890_p10)
}
  0x5e   : > { %1756 = dma.hbm_to_vmem [thread:$0]  (!%p2278_p9), %s2287_s15, 128, %s2290_s17, %s2292_s13  }
  0x5f   : > { %s2094_s3 = smov [#allocation10]   ;;  %s2095_s14 = smov [#allocation11]  }
  0x60   : > { %s343_s20 = sshll.u32 %s2094_s3, 4  ;;  %s357_s1 = sshll.u32 %s2095_s14, 4  ;;  %s344_s20 = int_to_ptr.vmem [resolvable:$true] %s343_s20  ;;  %s358_s1 = int_to_ptr.vmem [resolvable:$true] %s357_s1 }
  0x61   : > { %s1894_s24 = scalar_lea.hbm %s2643_s7, 256  ;;  %p2695_p8 = scmp.ne.s32.totalorder %s2687_s26, 0 }
  0x62   : > { %p1895_p4 = scmp.ne.s32.totalorder %s2643_s7, %s1894_s24  ;;  %p1901_p7 = scmp.lt.u32.totalorder %s1894_s24, %s2643_s7 }
  0x64   : > { %p1897_p11 = pnand %p1895_p4, %p2695_p8 }
  0x66   : > { %p1898_p13 = pneg %p1897_p11 }
  0x68   : > { %p1903_p2 = pnand %p1901_p7, %p1898_p13 }
  0x6a   : > { %1906 = shalt.err (!%p1903_p2)
}
  0x6b   : > { %s1907_s17 = scalar_lea.vmem %s344_s20, 256  ;;  %p1915_p1 = scmp.lt.s32.totalorder %s344_s20, %s344_s20 }
  0x6c   : > { %p1908_p3 = scmp.ne.s32.totalorder %s344_s20, %s1907_s17  ;;  %p1916_p6 = scmp.lt.s32.totalorder %s1907_s17, %s1907_s17 }
  0x6e   : > { %p1910_p5 = pnand %p1908_p3, %p2695_p8  ;;  %p1917_p10 = por %p1916_p6, %p1915_p1 }
  0x70   : > { %p1911_p12 = pneg %p1910_p5 }
  0x72   : > { %p1918_p9 = pnand %p1917_p10, %p1911_p12 }
  0x74   : > { %1921 = shalt.err (!%p1918_p9)
}
  0x75   : > { %p2696_p4 = scmp.ne.s32.totalorder %s2684_s28, 0  ;;  %s2697_s10 = smov 4  }
  0x76   : > { %s2698_s15 = smov 64   ;;  %s1922_s12 = scalar_lea.hbm %s2644_s8, 16 }
  0x77   : > { %1746 = dma.hbm_to_vmem [thread:$0]  (!%p2696_p4), %s2643_s7, 256, %s344_s20, [#allocation9], %s2698_s15, %s2698_s15, %s2697_s10  }
  0x78   : > { %p1923_p11 = scmp.ne.s32.totalorder %s2644_s8, %s1922_s12  ;;  %p1929_p7 = scmp.lt.u32.totalorder %s1922_s12, %s2644_s8 }
  0x7a   : > { %p1925_p9 = pnand %p1923_p11, %p2695_p8 }
  0x7c   : > { %p1926_p13 = pneg %p1925_p9 }
  0x7e   : > { %p1931_p2 = pnand %p1929_p7, %p1926_p13 }
  0x80   : > { %1934 = shalt.err (!%p1931_p2)
}
  0x81   : > { %s1935_s4 = scalar_lea.vmem %s358_s1, 16  ;;  %s1942_s20 = scalar_lea.vmem %s358_s1, 32 }
  0x82   : > { %p1936_p3 = scmp.ne.s32.totalorder %s358_s1, %s1935_s4  ;;  %p1943_p1 = scmp.lt.s32.totalorder %s358_s1, %s358_s1 }
  0x83   : > { %p1944_p6 = scmp.lt.s32.totalorder %s1942_s20, %s1935_s4 }
  0x84   : > { %p1938_p5 = pnand %p1936_p3, %p2695_p8 }
  0x85   : > { %p1945_p10 = por %p1944_p6, %p1943_p1 }
  0x86   : > { %p1939_p12 = pneg %p1938_p5 }
  0x88   : > { %p1946_p0 = pnand %p1945_p10, %p1939_p12 }
  0x8a   : > { %1949 = shalt.err (!%p1946_p0)
}
  0x8b   : > { %1749 = dma.hbm_to_vmem [thread:$0]  (!%p2696_p4), %s2644_s8, 16, %s358_s1, [#allocation12]  }
  0x8c   : > { %s2365_s3 = scalar_lea.hbm %s2636_s0, %s2272_s29  ;;  %s378_s14 = scalar_lea.vmem [#allocation2], %s2276_s11 }
  0x8d   : > { %s385_s28 = sshll.u32 %s378_s14, 4  ;;  %s2374_s30 = scalar_lea.hbm %s2638_s2, %s2272_s29  ;;  %s2368_s28 = int_to_ptr.vmem [resolvable:$true] %s385_s28 }
  0x8e   : > { %s2699_s22 = sand.u32 1, %s2084_s19   ;;  %s1950_s17 = scalar_lea.hbm %s2365_s3, 128 }
  0x8f   : > { %s375_s1 = scalar_lea.sflag [#allocation3], %s2699_s22  ;;  %p1951_p0 = scmp.ne.s32.totalorder %s2365_s3, %s1950_s17 }
  0x90   : > { %p2700_p8 = scmp.ne.s32.totalorder %s2694_s16, 0  ;;  %s1955_s10 = scalar_lea.hbm %s2636_s0, 256 }
  0x91   : > { %p1956_p9 = scmp.lt.u32.totalorder %s2365_s3, %s2636_s0  ;;  %p1957_p13 = scmp.lt.u32.totalorder %s1955_s10, %s1950_s17 }
  0x92   : > { %p1953_p4 = pnand %p1951_p0, %p2700_p8  ;;  %p1959_p2 = scmp.lt.u32.totalorder %s1950_s17, %s2365_s3 }
  0x93   : > { %p1958_p7 = por %p1957_p13, %p1956_p9 }
  0x94   : > { %p1954_p11 = pneg %p1953_p4 }
  0x95   : > { %p1960_p3 = por %p1959_p2, %p1958_p7 }
  0x97   : > { %p1961_p5 = pnand %p1960_p3, %p1954_p11 }
  0x99   : > { %1964 = shalt.err (!%p1961_p5)
}
  0x9a   : > { %s1965_s29 = scalar_lea.vmem %s2368_s28, 128  ;;  %s2096_s9 = smov [#allocation2]  }
  0x9b   : > { %p1966_p12 = scmp.ne.s32.totalorder %s2368_s28, %s1965_s29  ;;  %s1970_s14 = sshll.u32 %s2096_s9, 4  ;;  %s1971_s14 = int_to_ptr.vmem [resolvable:$false] %s1970_s14 }
  0x9c   : > { %s1972_s12 = scalar_lea.vmem %s1971_s14, 256  ;;  %p1973_p10 = scmp.lt.s32.totalorder %s2368_s28, %s1971_s14 }
  0x9d   : > { %p1968_p1 = pnand %p1966_p12, %p2700_p8  ;;  %p1974_p0 = scmp.lt.s32.totalorder %s1972_s12, %s1965_s29 }
  0x9f   : > { %p1969_p6 = pneg %p1968_p1  ;;  %p1975_p4 = por %p1974_p0, %p1973_p10 }
  0xa1   : > { %p1976_p9 = pnand %p1975_p4, %p1969_p6 }
  0xa3   : > { %1979 = shalt.err (!%p1976_p9)
}
  0xa4   : > { %p2701_p11 = scmp.ne.s32.totalorder %s2692_s27, 0  ;;  %s414_s24 = scalar_lea.vmem [#allocation7], %s2276_s11 }
  0xa5   : > { %s421_s22 = sshll.u32 %s414_s24, 4  ;;  %s1980_s17 = scalar_lea.hbm %s2374_s30, 128  ;;  %s422_s22 = int_to_ptr.vmem [resolvable:$true] %s421_s22 }
  0xa6   : > { %1753 = dma.hbm_to_vmem [thread:$0]  (!%p2701_p11), %s2365_s3, 128, %s2368_s28, %s375_s1  }
  0xa7   : > { %p1981_p13 = scmp.ne.s32.totalorder %s2374_s30, %s1980_s17  ;;  %s1985_s10 = scalar_lea.hbm %s2638_s2, 256 }
  0xa8   : > { %p1986_p3 = scmp.lt.u32.totalorder %s2374_s30, %s2638_s2  ;;  %p1987_p5 = scmp.lt.u32.totalorder %s1985_s10, %s1980_s17 }
  0xa9   : > { %p1983_p7 = pnand %p1981_p13, %p2700_p8  ;;  %p1989_p1 = scmp.lt.u32.totalorder %s1980_s17, %s2374_s30 }
  0xaa   : > { %p1988_p12 = por %p1987_p5, %p1986_p3 }
  0xab   : > { %p1984_p2 = pneg %p1983_p7 }
  0xac   : > { %p1990_p6 = por %p1989_p1, %p1988_p12 }
  0xae   : > { %p1991_p10 = pnand %p1990_p6, %p1984_p2 }
  0xb0   : > { %1994 = shalt.err (!%p1991_p10)
}
  0xb1   : > { %s1995_s11 = scalar_lea.vmem %s422_s22, 128  ;;  %s2097_s3 = smov [#allocation7]  }
  0xb2   : > { %p1996_p0 = scmp.ne.s32.totalorder %s422_s22, %s1995_s11  ;;  %s2000_s28 = sshll.u32 %s2097_s3, 4  ;;  %s2001_s28 = int_to_ptr.vmem [resolvable:$false] %s2000_s28 }
  0xb3   : > { %s2002_s1 = scalar_lea.vmem %s2001_s28, 256  ;;  %p2003_p13 = scmp.lt.s32.totalorder %s422_s22, %s2001_s28 }
  0xb4   : > { %p1998_p4 = pnand %p1996_p0, %p2700_p8  ;;  %p2004_p7 = scmp.lt.s32.totalorder %s2002_s1, %s1995_s11 }
  0xb6   : > { %p1999_p9 = pneg %p1998_p4  ;;  %p2005_p11 = por %p2004_p7, %p2003_p13 }
  0xb8   : > { %p2006_p3 = pnand %p2005_p11, %p1999_p9 }
  0xba   : > { %2009 = shalt.err (!%p2006_p3)
}
  0xbb   : > { %p2702_p5 = scmp.ne.s32.totalorder %s2692_s27, 0  ;;  %p2703_p2 = scmp.ne.s32.totalorder %s2683_s25, 0 }
  0xbc   : > { %s2421_s16 = sand.u32 (!%p2703_p2), 1, %s2080_s18   ;;  %p2704_p8 = scmp.ne.s32.totalorder (!%p2703_p2), %s2680_s23, 0 }
  0xbd   : > { %1759 = dma.hbm_to_vmem [thread:$0]  (!%p2702_p5), %s2374_s30, 128, %s422_s22, %s2292_s13  }
  0xbe   : > { %430 = sbr.rel (%p2703_p2) target bundleno = 2491 (0x9bb), region = 64  ;;  %s2424_s29 = sshll.u32 (!%p2703_p2), %s2421_s16, 3 }
  0xbf   : > { %s433_s9 = scalar_lea.sflag (!%p2703_p2), [#allocation3], %s2421_s16  ;;  %s436_s14 = scalar_lea.vmem (!%p2703_p2), [#allocation2], %s2424_s29 }
  0xc5   : > { %2055 = dma.done.wait (%p2704_p8), %s433_s9, 128  }
  0xc6   : > { %2057 = vsyncadd (%p2704_p8), %s433_s9, 4294967168  ;;  %s441_s25 = sand.u32 1, %s2185_s21   ;;  %s445_s27 = scalar_lea.vmem [#allocation5], %s2424_s29 }
  0xc7   : > { %s442_s13 = scalar_lea.sflag [#allocation6], %s441_s25 }
  0xc8   : > { %2059 = dma.done.wait (%p2704_p8), %s442_s13, 256  }
  0xc9   : > { %2061 = vsyncadd (%p2704_p8), %s442_s13, 4294967040  ;;  %s454_s30 = scalar_lea.vmem [#allocation7], %s2424_s29  ;;  %p2705_p11 = scmp.eq.s32.totalorder %s2185_s21, 0 }
  0xcb   : > { %2063 = dma.done.wait (%p2705_p11), [#allocation9], 512   ;;  %p2706_p12 = pmov %p2705_p11 }
  0xcc   : > { %p2707_p1 = pmov %p2705_p11 }
  0xcd   : > { %2065 = vsyncadd (%p2706_p12), [#allocation9], 4294966784 }
  0xce   : > { %2067 = dma.done.wait (%p2707_p1), [#allocation12], 16   ;;  %p2708_p6 = pmov %p2707_p1 }
  0xcf   : > { %v2098_v0 = vmov 0.0   ;;  %vm2099_vm0 = vmmov 0   ;;  %v1814_v1 = vld [vmem:[%s2641_s5] sm:$0xff]   ;;  %v1815_v2 = vld [vmem:[%s2641_s5 + $0x8] sm:$0xff]   ;;  %v1816_v3 = vld [vmem:[#allocation8] sm:$0xff]   ;;  %vm545_vm1 = vcmask 261120  }
  0xd0   : > { %2069 = vsyncadd (%p2708_p6), [#allocation12], 4294967280  ;;  %1619 = vmatprep.subr.bf16.mxu1 %v2098_v0  ;;  %1611 = vmatprep.subr.bf16.mxu0 %v2098_v0  ;;  %v518_v4 = vld [vmem:[%s445_s27] sm:$0xff]  ;;  %v516_v6 = vld [vmem:[%s436_s14] sm:$0xff]  ;;  %s2709_s15 = sld [smem:[#allocation27_spill]]  ;;  %vm725_vm2 = vcmask 64512  }
  0xd1   : > { %1623 = vmatprep.mubr.msk.bf16.mxu1 %vm2099_vm0, %v2098_v0  ;;  %1615 = vmatprep.mubr.msk.bf16.mxu0 %vm2099_vm0, %v2098_v0  ;;  %v1817_v5 = vld [vmem:[#allocation8 + $0x8] sm:$0xff]   ;;  %v519_v7 = vpack.c.bf16 %v518_v4, %v518_v4  ;;  %v517_v8 = vpack.c.bf16 %v516_v6, %v516_v6  ;;  %v1550_v9 = vld [vmem:[%s2642_s6] ss:$0 sm:$0xff]  ;;  %s2100_s26 = smov 120   ;;  %s2101_s11 = smov 112   ;;  %v1819_v25 = vld [vmem:[#allocation10 + $0x8] sm:$0xff]  }
  0xd2   : > { %1620 = vmatpush3.bf16.msra.mxu1 %v1814_v1  ;;  %1612 = vmatpush3.bf16.msra.mxu0 %v1816_v3  ;;  %v1818_v24 = vld [vmem:[#allocation10] sm:$0xff]   ;;  %v1554_v42 = vld [vmem:[#allocation11] ss:$0 sm:$0xff]  ;;  %vm787_vm3 = vcmask 1043456   ;;  %s2710_s1 = sld [smem:[#allocation28_spill]]  ;;  %s2102_s9 = smov 104  }
  0xd3   : > { %1621 = vmatprep.subr.bf16.mxu1 %v2098_v0  ;;  %1613 = vmatprep.subr.bf16.mxu0 %v2098_v0  ;;  %v520_v26 = vld [vmem:[%s454_s30] sm:$0xff]  ;;  %s2711_s22 = sld [smem:[#allocation29_spill]]  ;;  %s2712_s17 = sld [smem:[#allocation24_spill]] }
  0xd4   : > { %v521_v27 = vpack.c.bf16 %v520_v26, %v520_v26  ;;  %s1575_s4 = sshll.u32 %s2185_s21, 7  ;;  %s514_s20 = scalar_lea.vmem [#allocation13], %s2424_s29 }
  0xd5   : > { %s1384_s10 = sshll.u32 %s514_s20, 4  ;;  %s1371_s21 = scalar_lea.sflag [#allocation4], %s2421_s16  ;;  %s2593_s10 = int_to_ptr.vmem [resolvable:$true] %s1384_s10 }
  0xd6   : > { %1622 = vmatpush3.bf16.msra.mxu1 %v1815_v2  ;;  %1614 = vmatpush3.bf16.msra.mxu0 %v1817_v5  ;;  %v1546_v11 = vld [vmem:[%s2709_s15] ss:$0 sm:$0xff]  ;;  %s2010_s29 = scalar_lea.vmem %s2593_s10, 128  ;;  %s2103_s28 = smov [#allocation13]  }
  0xd7   : > { %1635 = vmatprep.subr.bf16.mxu1 %v2098_v0  ;;  %1627 = vmatprep.subr.bf16.mxu0 %v2098_v0  ;;  %p2011_p10 = scmp.ne.s32.totalorder %s2593_s10, %s2010_s29 }
  0xd8   : > { %v832_v56 = vld [vmem:[%s2710_s1] sm:$0xf] }
  0xd9   : > { %1624 = vmatmul.mubr.msk.bf16.vlgmr.msra.gmra.mrb[0].mxu1 %vm545_vm1, %v519_v7  ;;  %1616 = vmatmul.mubr.msk.bf16.vlgmr.msra.gmra.mrb[0].mxu0 %vm545_vm1, %v517_v8  ;;  %v837_v57 = vsel %vm787_vm3, %v832_v56, 0  ;;  %p2714_p0 = scmp.ne.s32.totalorder %s2712_s17, 0 }
  0xda   : > { %1637 = vmatprep.mubr.msk.bf16.mxu1 %vm2099_vm0, %v2098_v0  ;;  %1631 = vmatprep.mubr.msk.bf16.mxu0 %vm2099_vm0, %v2098_v0 }
  0xdb   : > { %1628 = vmatpush3.bf16.msra.mxu0 %v1818_v24  ;;  %p2012_p4 = pnand %p2011_p10, %p2714_p0 }
  0xdc   : > { %1629 = vmatprep.subr.bf16.mxu0 %v2098_v0 }
  0xdd   : > { %p2013_p9 = pneg %p2012_p4 }
  0xdf   : > { %1630 = vmatpush3.bf16.msra.mxu0 %v1819_v25 }
  0xe0   : > { %1641 = vmatprep.subr.bf16.mxu0 %v2098_v0 }
  0xe2   : > { %1632 = vmatmul.mubr.msk.bf16.vlgmr.msra.gmra.mrb[4].mxu0 %vm545_vm1, %v521_v27 }
  0xe3   : > { %1643 = vmatprep.mubr.msk.bf16.mxu0 %vm2099_vm0, %v2098_v0 }
 0x1ac   : > { %v649_v10 = vpop.f32.mrb[0].mxu1  ;;  %v583_v15 = vpop.f32.mrb[0].mxu0 }
 0x1ad   : > { %v650_v12 = vadd.f32 %v1550_v9, %v649_v10  ;;  %v1625_v13 = vpop.f32.mrb[1].mxu1  ;;  %v584_v18 = vadd.f32 %v1546_v11, %v583_v15  ;;  %v1617_v19 = vpop.f32.mrb[1].mxu0 }
 0x1ae   : > { %v652_v14 = vpop.f32.mrb[2].mxu1  ;;  %v586_v20 = vpop.f32.mrb[2].mxu0 }
 0x1af   : > { %v2475_v16 = vpack.c.bf16 %v650_v12, %v650_v12  ;;  %v1626_v17 = vpop.f32.mrb[3].mxu1  ;;  %v2479_v21 = vpack.c.bf16 %v584_v18, %v584_v18  ;;  %v1618_v23 = vpop.f32.mrb[3].mxu0 }
 0x1b1   : > { %890 = vrot.lane.b32.xlu1 %v2475_v16, %s2100_s26  ;;  %v730_v22 = vsel %vm725_vm2, %v2475_v16, 0 }
 0x1b2   : > { %1636 = vmatpush3.bf16.xpose.msra.mxu1 %v730_v22 }
 0x1b3   : > { %1647 = vmatprep.subr.bf16.mxu1 %v2098_v0 }
 0x1b5   : > { %887 = vrot.lane.b32.xlu1 %v2479_v21, %s2100_s26  ;;  %v715_v33 = vpop.f32.mrb[4].mxu0 }
 0x1b6   : > { %v1633_v34 = vpop.f32.mrb[5].mxu0  ;;  %v716_v43 = vadd.f32 %v1554_v42, %v715_v33 }
 0x1b7   : > { %v718_v35 = vpop.f32.mrb[6].mxu0 }
 0x1b8   : > { %v1634_v36 = vpop.f32.mrb[7].mxu0  ;;  %v2501_v44 = vpack.c.bf16 %v716_v43, %v716_v43  ;;  %v1564_v35 = vld [vmem:[%s2710_s1 + $0x4] sm:$0xf] }
 0x1b9   : > { %1638 = vmatmul.mubr.msk.bf16.vlgmr.msra.gmra.mrb[4].mxu1 %vm725_vm2, %v2479_v21  ;;  %1049 = vrot.lane.b32.xlu1 %v2479_v21, %s2101_s11  ;;  %v1006_v36 = vsel %vm787_vm3, %v1564_v35, 0 }
 0x1ba   : > { %1649 = vmatprep.mubr.msk.bf16.mxu1 %vm2099_vm0, %v2098_v0  ;;  %v789_v45 = vsel %vm787_vm3, %v2501_v44, 0  ;;  %1648 = vmatpush3.bf16.msra.mxu1 %v837_v57 }
 0x1bb   : > { %1642 = vmatpush3.bf16.msra.mxu0 %v789_v45  ;;  %1659 = vmatprep.subr.bf16.mxu1 %v2098_v0 }
 0x1bc   : > { %1653 = vmatprep.subr.bf16.mxu0 %v2098_v0 }
 0x223   : > { %v891_v49 = vpop.permute.xlu1 %890 }
 0x224   : > { %v896_v51 = vsel %vm725_vm2, %v891_v49, 0 }
 0x227   : > { %v888_v53 = vpop.permute.xlu1 %887 }
 0x22b   : > { %v1050_v55 = vpop.permute.xlu1 %1049 }
 0x28c   : > { %v766_v28 = vpop.f32.mrb[4].mxu1 }
 0x28d   : > { %v1639_v29 = vpop.f32.mrb[5].mxu1  ;;  %v772_v30 = vsel %vm725_vm2, %v766_v28, -inf }
 0x28e   : > { %773 = vmax.xlane.f32.xlu0 %v772_v30  ;;  %v769_v31 = vpop.f32.mrb[6].mxu1 }
 0x28f   : > { %v1640_v32 = vpop.f32.mrb[7].mxu1 }
 0x31b   : > { %v774_v37 = vpop.xlane.xlu0 %773 }
 0x31c   : > { %v775_v38 = vsub.f32 %v766_v28, %v774_v37 }
 0x31e   : > { %v776_v39 = vmul.f32 1.442695, %v775_v38 }
 0x320   : > { %1820 = vpow2.f32 %v776_v39 }
 0x32a   : > { %v1821_v40 = vpop.eup %1820 }
 0x32b   : > { %v778_v41 = vsel %vm725_vm2, %v1821_v40, 0.0 }
 0x32c   : > { %779 = vadd.xlane.f32.xlu0 %v778_v41 }
 0x342   : > { %1051 = vrot.lane.b32.xlu0 %v2475_v16, %s2101_s11 }
 0x3b9   : > { %v780_v46 = vpop.xlane.xlu0 %779 }
 0x3ba   : > { %1822 = vrcp.f32 %v780_v46 }
 0x3bd   : > { %v1052_v52 = vpop.permute.xlu0 %1051 }
 0x3be   : > { %v1057_v54 = vsel %vm725_vm2, %v1052_v52, 0 }
 0x3c4   : > { %v1823_v47 = vpop.eup %1822 }
 0x3c5   : > { %v782_v48 = vmul.f32 %v1823_v47, %v1821_v40  ;;  %v1568_v47 = vld [vmem:[%s2710_s1 + $0x8] sm:$0xf] }
 0x3c7   : > { %v783_v50 = vpack.c.bf16 %v782_v48, %v782_v48 }
 0x3c9   : > { %1644 = vmatmul.mubr.msk.bf16.vlgmr.msra.gmra.mrb[8].mxu0 %vm725_vm2, %v783_v50 }
 0x3ca   : > { %1654 = vmatpush3.bf16.xpose.msra.mxu0 %v896_v51  ;;  %1655 = vmatprep.mubr.msk.bf16.mxu0 %vm2099_vm0, %v2098_v0  ;;  %v1166_v51 = vsel %vm787_vm3, %v1568_v47, 0 }
 0x3cb   : > { %1671 = vmatprep.subr.bf16.mxu0 %v2098_v0 }
 0x3d1   : > { %1656 = vmatmul.mubr.msk.bf16.vlgmr.msra.gmra.mrb[12].mxu0 %vm725_vm2, %v888_v53 }
 0x3d2   : > { %1672 = vmatpush3.bf16.xpose.msra.mxu0 %v1057_v54  ;;  %1673 = vmatprep.mubr.msk.bf16.mxu0 %vm2099_vm0, %v2098_v0 }
 0x3d3   : > { %1677 = vmatprep.subr.bf16.mxu0 %v2098_v0 }
 0x3d9   : > { %1674 = vmatmul.mubr.msk.bf16.vlgmr.msra.gmra.mrb[16].mxu0 %vm725_vm2, %v1050_v55 }
 0x3da   : > { %1679 = vmatprep.mubr.msk.bf16.mxu0 %vm2099_vm0, %v2098_v0 }
 0x49c   : > { %v825_v58 = vpop.f32.mrb[8].mxu0 }
 0x49d   : > { %v831_v59 = vpack.c.bf16 %v825_v58, %v825_v58  ;;  %v1645_v60 = vpop.f32.mrb[9].mxu0 }
 0x49e   : > { %v828_v61 = vpop.f32.mrb[10].mxu0 }
 0x49f   : > { %v1646_v62 = vpop.f32.mrb[11].mxu0  ;;  %1650 = vmatmul.mubr.msk.bf16.vlgmr.msra.gmra.mrb[8].mxu1 %vm725_vm2, %v831_v59 }
 0x4a0   : > { %1661 = vmatprep.mubr.msk.bf16.mxu1 %vm2099_vm0, %v2098_v0 }
 0x4a4   : > { %v932_v63 = vpop.f32.mrb[12].mxu0 }
 0x4a5   : > { %v1657_v1 = vpop.f32.mrb[13].mxu0  ;;  %v938_v9 = vsel %vm725_vm2, %v932_v63, -inf }
 0x4a6   : > { %v935_v2 = vpop.f32.mrb[14].mxu0  ;;  %v1572_v1 = vld [vmem:[%s2710_s1 + $0xc] sm:$0xf] }
 0x4a7   : > { %v1658_v3 = vpop.f32.mrb[15].mxu0 }
 0x4ac   : > { %v1093_v4 = vpop.f32.mrb[16].mxu0 }
 0x4ad   : > { %v1675_v5 = vpop.f32.mrb[17].mxu0  ;;  %v1099_v6 = vsel %vm725_vm2, %v1093_v4, -inf }
 0x4ae   : > { %1100 = vmax.xlane.f32.xlu1 %v1099_v6  ;;  %v1096_v7 = vpop.f32.mrb[18].mxu0 }
 0x4af   : > { %v1676_v8 = vpop.f32.mrb[19].mxu0 }
 0x4bf   : > { %1111 = vrot.lane.b32.xlu1 %v2501_v44, %s2101_s11  ;;  %s2713_s11 = sld [smem:[#allocation30_spill]] }
 0x4c3   : > { %1209 = vrot.lane.b32.xlu1 %v2479_v21, %s2102_s9 }
 0x4c5   : > { %s2591_s3 = scalar_lea.hbm %s2713_s11, %s1575_s4 }
 0x4e7   : > { %939 = vmax.xlane.f32.xlu1 %v938_v9  ;;  %v1561_v9 = vld [vmem:[%s2711_s22] ss:$0 sm:$0xff] }
 0x4f8   : > { %951 = vrot.lane.b32.xlu1 %v2501_v44, %s2100_s26 }
 0x53b   : > { %v1101_v10 = vpop.xlane.xlu1 %1100 }
 0x53c   : > { %v1102_v11 = vsub.f32 %v1093_v4, %v1101_v10  ;;  %v1326_v4 = vsel %vm787_vm3, %v1572_v1, 0 }
 0x53e   : > { %v1103_v12 = vmul.f32 1.442695, %v1102_v11 }
 0x53f   : > { %v1112_v13 = vpop.permute.xlu1 %1111 }
 0x540   : > { %1824 = vpow2.f32 %v1103_v12  ;;  %v1117_v14 = vsel %vm787_vm3, %v1112_v13, 0 }
 0x541   : > { %1678 = vmatpush3.bf16.msra.mxu0 %v1117_v14 }
 0x542   : > { %1689 = vmatprep.subr.bf16.mxu0 %v2098_v0 }
 0x543   : > { %v1210_v18 = vpop.permute.xlu1 %1209 }
 0x54a   : > { %v1825_v15 = vpop.eup %1824 }
 0x54b   : > { %v1105_v17 = vsel %vm725_vm2, %v1825_v15, 0.0 }
 0x54c   : > { %1106 = vadd.xlane.f32.xlu0 %v1105_v17 }
 0x562   : > { %1211 = vrot.lane.b32.xlu0 %v2475_v16, %s2102_s9 }
 0x574   : > { %v940_v19 = vpop.xlane.xlu1 %939 }
 0x575   : > { %v941_v20 = vsub.f32 %v932_v63, %v940_v19 }
 0x577   : > { %v942_v21 = vmul.f32 1.442695, %v941_v20 }
 0x578   : > { %v952_v22 = vpop.permute.xlu1 %951 }
 0x579   : > { %1826 = vpow2.f32 %v942_v21  ;;  %v957_v23 = vsel %vm787_vm3, %v952_v22, 0 }
 0x57a   : > { %1660 = vmatpush3.bf16.msra.mxu1 %v957_v23 }
 0x57b   : > { %1665 = vmatprep.subr.bf16.mxu1 %v2098_v0 }
 0x583   : > { %v1827_v24 = vpop.eup %1826 }
 0x584   : > { %v944_v25 = vsel %vm725_vm2, %v1827_v24, 0.0 }
 0x585   : > { %945 = vadd.xlane.f32.xlu0 %v944_v25 }
 0x5d9   : > { %v1107_v26 = vpop.xlane.xlu0 %1106 }
 0x5da   : > { %1828 = vrcp.f32 %v1107_v26 }
 0x5dd   : > { %v1212_v16 = vpop.permute.xlu0 %1211 }
 0x5de   : > { %v1217_v30 = vsel %vm725_vm2, %v1212_v16, 0 }
 0x5e4   : > { %v1829_v27 = vpop.eup %1828 }
 0x5e5   : > { %v1109_v28 = vmul.f32 %v1829_v27, %v1825_v15 }
 0x5e7   : > { %v1110_v29 = vpack.c.bf16 %v1109_v28, %v1109_v28 }
 0x5e9   : > { %1680 = vmatmul.mubr.msk.bf16.vlgmr.msra.gmra.mrb[20].mxu0 %vm725_vm2, %v1110_v29 }
 0x5ea   : > { %1690 = vmatpush3.bf16.xpose.msra.mxu0 %v1217_v30  ;;  %1691 = vmatprep.mubr.msk.bf16.mxu0 %vm2099_vm0, %v2098_v0 }
 0x5f1   : > { %1692 = vmatmul.mubr.msk.bf16.vlgmr.msra.gmra.mrb[24].mxu0 %vm725_vm2, %v1210_v18 }
 0x612   : > { %v946_v31 = vpop.xlane.xlu0 %945 }
 0x613   : > { %1830 = vrcp.f32 %v946_v31 }
 0x61d   : > { %v1831_v32 = vpop.eup %1830 }
 0x61e   : > { %v948_v33 = vmul.f32 %v1831_v32, %v1827_v24 }
 0x620   : > { %v949_v34 = vpack.c.bf16 %v948_v33, %v948_v33 }
 0x622   : > { %1662 = vmatmul.mubr.msk.bf16.vlgmr.msra.gmra.mrb[12].mxu1 %vm725_vm2, %v949_v34 }
 0x623   : > { %1667 = vmatprep.mubr.msk.bf16.mxu1 %vm2099_vm0, %v2098_v0  ;;  %1666 = vmatpush3.bf16.msra.mxu1 %v1006_v36 }
 0x624   : > { %1683 = vmatprep.subr.bf16.mxu1 %v2098_v0 }
 0x6bc   : > { %v1153_v37 = vpop.f32.mrb[20].mxu0 }
 0x6bd   : > { %v1681_v38 = vpop.f32.mrb[21].mxu0  ;;  %v1159_v54 = vpack.c.bf16 %v1153_v37, %v1153_v37 }
 0x6be   : > { %v1156_v39 = vpop.f32.mrb[22].mxu0 }
 0x6bf   : > { %v1682_v40 = vpop.f32.mrb[23].mxu0 }
 0x6c4   : > { %v1253_v41 = vpop.f32.mrb[24].mxu0 }
 0x6c5   : > { %v1693_v42 = vpop.f32.mrb[25].mxu0  ;;  %v1259_v43 = vsel %vm725_vm2, %v1253_v41, -inf }
 0x6c6   : > { %1260 = vmax.xlane.f32.xlu0 %v1259_v43  ;;  %v1256_v45 = vpop.f32.mrb[26].mxu0 }
 0x6c7   : > { %v1694_v46 = vpop.f32.mrb[27].mxu0 }
 0x6f5   : > { %v993_v48 = vpop.f32.mrb[12].mxu1 }
 0x6f6   : > { %v999_v49 = vpack.c.bf16 %v993_v48, %v993_v48  ;;  %v1663_v50 = vpop.f32.mrb[13].mxu1 }
 0x6f7   : > { %v996_v52 = vpop.f32.mrb[14].mxu1 }
 0x6f8   : > { %v1664_v53 = vpop.f32.mrb[15].mxu1  ;;  %1668 = vmatmul.mubr.msk.bf16.vlgmr.msra.gmra.mrb[8].mxu1 %vm725_vm2, %v999_v49 }
 0x6f9   : > { %1684 = vmatpush3.bf16.msra.mxu1 %v1166_v51  ;;  %1685 = vmatprep.mubr.msk.bf16.mxu1 %vm2099_vm0, %v2098_v0 }
 0x6fa   : > { %1695 = vmatprep.subr.bf16.mxu1 %v2098_v0 }
 0x704   : > { %1686 = vmatmul.mubr.msk.bf16.vlgmr.msra.gmra.mrb[8].mxu1 %vm725_vm2, %v1159_v54 }
 0x705   : > { %1697 = vmatprep.mubr.msk.bf16.mxu1 %vm2099_vm0, %v2098_v0 }
 0x753   : > { %v1261_v55 = vpop.xlane.xlu0 %1260 }
 0x754   : > { %v1262_v56 = vsub.f32 %v1253_v41, %v1261_v55 }
 0x756   : > { %v1263_v57 = vmul.f32 1.442695, %v1262_v56 }
 0x758   : > { %1832 = vpow2.f32 %v1263_v57 }
 0x762   : > { %v1833_v58 = vpop.eup %1832 }
 0x763   : > { %v1265_v59 = vsel %vm725_vm2, %v1833_v58, 0.0 }
 0x764   : > { %1266 = vadd.xlane.f32.xlu0 %v1265_v59 }
 0x77a   : > { %1271 = vrot.lane.b32.xlu0 %v2501_v44, %s2102_s9  ;;  %s2014_s9 = sshll.u32 %s2103_s28, 4  ;;  %s2015_s9 = int_to_ptr.vmem [resolvable:$false] %s2014_s9 }
 0x77b   : > { %s2016_s14 = scalar_lea.vmem %s2015_s9, 256  ;;  %p2017_p13 = scmp.lt.s32.totalorder %s2593_s10, %s2015_s9 }
 0x77c   : > { %p2018_p7 = scmp.lt.s32.totalorder %s2016_s14, %s2010_s29 }
 0x77e   : > { %p2019_p3 = por %p2018_p7, %p2017_p13 }
 0x780   : > { %p2020_p5 = pnand %p2019_p3, %p2013_p9 }
 0x7f1   : > { %v1267_v60 = vpop.xlane.xlu0 %1266 }
 0x7f2   : > { %1834 = vrcp.f32 %v1267_v60 }
 0x7f5   : > { %v1272_v61 = vpop.permute.xlu0 %1271 }
 0x7f6   : > { %v1277_v62 = vsel %vm787_vm3, %v1272_v61, 0 }
 0x7f7   : > { %1696 = vmatpush3.bf16.msra.mxu1 %v1277_v62 }
 0x7f8   : > { %1701 = vmatprep.subr.bf16.mxu1 %v2098_v0 }
 0x7fc   : > { %v1835_v63 = vpop.eup %1834 }
 0x7fd   : > { %v1269_v2 = vmul.f32 %v1835_v63, %v1833_v58 }
 0x7ff   : > { %v1270_v3 = vpack.c.bf16 %v1269_v2, %v1269_v2 }
 0x801   : > { %1698 = vmatmul.mubr.msk.bf16.vlgmr.msra.gmra.mrb[16].mxu1 %vm725_vm2, %v1270_v3 }
 0x802   : > { %1702 = vmatpush3.bf16.msra.mxu1 %v1326_v4  ;;  %1703 = vmatprep.mubr.msk.bf16.mxu1 %vm2099_vm0, %v2098_v0 }
 0x8d4   : > { %v1313_v44 = vpop.f32.mrb[16].mxu1 }
 0x8d5   : > { %v1319_v5 = vpack.c.bf16 %v1313_v44, %v1313_v44  ;;  %v1699_v6 = vpop.f32.mrb[17].mxu1 }
 0x8d6   : > { %v1316_v7 = vpop.f32.mrb[18].mxu1 }
 0x8d7   : > { %v1700_v8 = vpop.f32.mrb[19].mxu1  ;;  %1704 = vmatmul.mubr.msk.bf16.vlgmr.msra.gmra.mrb[8].mxu1 %vm725_vm2, %v1319_v5 }
 0x9aa   : > { %v1362_v10 = vpop.f32.mrb[8].mxu1 }
 0x9ab   : > { %v1707_v11 = vadd.f32 %v1561_v9, %v1362_v10  ;;  %v1705_v12 = vpop.f32.mrb[9].mxu1 }
 0x9ac   : > { %v1365_v0 = vpop.f32.mrb[10].mxu1 }
 0x9ad   : > { %v1706_v13 = vpop.f32.mrb[11].mxu1  ;;  %1369 = vst.msk [vmem:[%s514_s20] sm:$0xff] %vm545_vm1, %v1707_v11 }
 0x9ae   : > { %2023 = shalt.err (!%p2020_p5)
}
 0x9af   : > { %s2024_s16 = scalar_lea.hbm %s2591_s3, 128  ;;  %s2028_s27 = scalar_lea.hbm %s2713_s11, 256 }
 0x9b0   : > { %p2025_p2 = scmp.ne.s32.totalorder %s2591_s3, %s2024_s16  ;;  %p2029_p12 = scmp.lt.u32.totalorder %s2591_s3, %s2713_s11 }
 0x9b1   : > { %p2030_p1 = scmp.lt.u32.totalorder %s2028_s27, %s2024_s16  ;;  %p2032_p10 = scmp.lt.u32.totalorder %s2024_s16, %s2591_s3 }
 0x9b2   : > { %p2026_p8 = pnand %p2025_p2, %p2714_p0 }
 0x9b3   : > { %p2031_p6 = por %p2030_p1, %p2029_p12 }
 0x9b4   : > { %p2027_p11 = pneg %p2026_p8 }
 0x9b5   : > { %p2033_p4 = por %p2032_p10, %p2031_p6 }
 0x9b7   : > { %p2034_p9 = pnand %p2033_p4, %p2027_p11 }
 0x9b9   : > { %2037 = shalt.err (!%p2034_p9)
}
 0x9ba   : > { %1738 = dma.vmem_to_hbm [thread:$0]  (%p2714_p0), %s2593_s10, 128, %s2591_s3, %s1371_s21  }
 0x9bb PF: > { %s2715_s12 = sld [smem:[#allocation19_spill]]  ;;  %s2716_s24 = sld [smem:[#allocation21_spill]] }
 0x9bc   : > { %s2717_s22 = sld [smem:[#allocation20_spill]] }
 0x9c1   : > { %s1396_s4 = sand.u32 1, %s2715_s12   ;;  %p2718_p13 = scmp.ne.s32.totalorder %s2716_s24, 0 }
 0x9c2   : > { %p2719_p7 = scmp.ge.s32.totalorder %s2717_s22, 2  ;;  %s1397_s20 = scalar_lea.sflag [#allocation4], %s1396_s4 }
 0x9c4   : > { %p1761_p3 = pnand %p2719_p7, %p2718_p13 }
 0x9c6   : > { %2071 = dma.done.wait (!%p1761_p3), %s1397_s20, 128  }
 0x9c7   : > { %2073 = vsyncadd (!%p1761_p3), %s1397_s20, 4294967168  ;;  %s2720_s20 = sld [smem:[#allocation22_spill]]  ;;  %s2721_s15 = sld [smem:[#allocation23_spill]] }
 0x9c8   : > { %s2722_s17 = smov %s2080_s18  ;;  %s2723_s18 = smov %s2084_s19 }
 0x9cd   : > { %p29_p5 = scmp.ge.s32.totalorder %s2720_s20, 4   ;;  %s2724_s19 = smov %s2721_s15 }
 0x9cf   :  { %31 = sbr.rel (!%p29_p5) target bundleno = 16 (0x10), region = 148 }
 0x9d6   :  { %1402 = vsyncpa [#allocation3], 1 }
 0x9d7   :  { %1404 = vsyncpa [#allocation3 + $0x1], 1 }
 0x9d8   :  { %1405 = vsyncpa [#allocation6], 1 }
 0x9d9   :  { %1407 = vsyncpa [#allocation6 + $0x1], 1 }
 0x9da   :  { %1408 = vsyncpa [#allocation9], 1 }
 0x9db   :  { %1409 = vsyncpa [#allocation12], 1 }
 0x9dc   :  { %1410 = vsyncpa [#allocation4], 1 }
 0x9dd   :  { %1412 = vsyncpa [#allocation4 + $0x1], 1 }

</bundles_post_ra>
